<compile_context>
chip_gen: v6e
topology: v6e:2x2x1
jax: 0.10.0
libtpu: 0.0.40
codegen_flags: <defaults>
</compile_context>

<pallas_src>
import math

import jax
import jax.numpy as jnp
from jax.experimental import pallas as pl
from jax.experimental.pallas import tpu as pltpu


def _cross_attn_kernel(x_ref, ctx_ref,
                       wq_ref, bq_ref, wk_ref, bk_ref,
                       wv_ref, bv_ref, wo_ref, bo_ref,
                       o_ref):
    # x_ref:   (block_b, Sq, D)  bf16      ctx_ref: (block_b, Skv, D) bf16
    # wq/wk/wv_ref: (heads, D, hd) bf16    wo_ref:  (heads, hd, D)    bf16
    # bq/bk/bv_ref: (heads, 1, hd) f32     bo_ref:  (1, D)            f32
    block_b, sq, d = x_ref.shape
    skv = ctx_ref.shape[1]
    heads = wq_ref.shape[0]

    wq = wq_ref[...]
    wk = wk_ref[...]
    wv = wv_ref[...]
    wo = wo_ref[...]
    bq = bq_ref[...]
    bk = bk_ref[...]
    bv = bv_ref[...]
    bo = bo_ref[...]

    # Static unroll over the (small) batch tile; the per-step pipeline overhead
    # is paid once for the whole tile.
    for b in range(block_b):
        # Broadcast along a new leading (heads) dim: cheap, no lane/sublane move.
        xh = jnp.broadcast_to(x_ref[b], (heads, sq, d))      # (H, Sq, D) bf16
        ch = jnp.broadcast_to(ctx_ref[b], (heads, skv, d))   # (H, Skv, D) bf16

        # Per-head projections as ONE batched matmul each (scale folded into wq/bq).
        q = jnp.einsum('hse,hed->hsd', xh, wq,
                       preferred_element_type=jnp.float32) + bq   # (H, Sq, hd)
        k = jnp.einsum('hse,hed->hsd', ch, wk,
                       preferred_element_type=jnp.float32) + bk   # (H, Skv, hd)
        v = jnp.einsum('hse,hed->hsd', ch, wv,
                       preferred_element_type=jnp.float32) + bv   # (H, Skv, hd)

        # Scaled-dot-product attention, batched over heads.
        dots = jnp.einsum('hqd,hkd->hqk',
                          q.astype(jnp.bfloat16), k.astype(jnp.bfloat16),
                          preferred_element_type=jnp.float32)     # (H, Sq, Skv)
        dots = dots - jnp.max(dots, axis=-1, keepdims=True)
        p = jnp.exp(dots)
        attn = p * pl.reciprocal(jnp.sum(p, axis=-1, keepdims=True), approx=True)
        # (dropout on attn is identity in eval mode)

        ov = jnp.einsum('hqk,hkd->hqd',
                        attn.astype(jnp.bfloat16), v.astype(jnp.bfloat16),
                        preferred_element_type=jnp.float32)       # (H, Sq, hd)

        # Output projection: sum over heads of o_h @ Wo_h — mathematically the
        # concat(heads) @ Wo.T, but with no lane-axis concatenate.
        oh = jnp.einsum('hqd,hde->hqe',
                        ov.astype(jnp.bfloat16), wo,
                        preferred_element_type=jnp.float32)       # (H, Sq, D)
        out = jnp.sum(oh, axis=0) + bo                            # (Sq, D)

        o_ref[b] = out.astype(o_ref.dtype)


def prepare_cross_attention_params(params, *, heads):
    """One-time parameter prep (transpose, head split, scale fold, bf16 cast).

    Call this once when the parameters are created — not on every forward.
    PyTorch nn.Linear stores W as (out, in) and computes x @ W.T + b.
    """
    D = params['wq'].shape[0]
    hd = D // heads
    scale = hd ** (-0.5)

    def split_out_heads(w):  # (out, in) -> (heads, in, hd)
        return jnp.transpose(w.T.reshape(D, heads, hd), (1, 0, 2))

    return {
        # scale folded into the query projection (weights and bias)
        'wq': (split_out_heads(params['wq']) * scale).astype(jnp.bfloat16),
        'bq': (params['bq'].reshape(heads, 1, hd) * scale).astype(jnp.float32),
        'wk': split_out_heads(params['wk']).astype(jnp.bfloat16),
        'bk': params['bk'].reshape(heads, 1, hd).astype(jnp.float32),
        'wv': split_out_heads(params['wv']).astype(jnp.bfloat16),
        'bv': params['bv'].reshape(heads, 1, hd).astype(jnp.float32),
        # output projection: split the *input* (concat) dim into heads
        'wo': params['wo'].T.reshape(heads, hd, D).astype(jnp.bfloat16),
        'bo': params['bo'].reshape(1, D).astype(jnp.float32),
    }


def cross_attention_layer(x, context, prep, *, heads, block_b=None):
    """Pallas implementation of CrossAttentionLayer.forward (eval mode).

    `prep` must come from prepare_cross_attention_params.
    """
    B, Sq, D = x.shape
    _, Skv, _ = context.shape
    hd = D // heads
    out_dtype = x.dtype

    if block_b is None:
        # Whole batch per grid step when small; otherwise a divisor of B <= 8.
        block_b = B if B <= 8 else math.gcd(B, 8)
    assert B % block_b == 0, "batch must be divisible by block_b"

    # bf16 activations into the kernel (halves input DMA); f32 accumulate inside.
    x_bf = x.astype(jnp.bfloat16)
    ctx_bf = context.astype(jnp.bfloat16)

    const = lambda *shape: pl.BlockSpec(shape, lambda b: (0,) * len(shape))

    return pl.pallas_call(
        _cross_attn_kernel,
        out_shape=jax.ShapeDtypeStruct((B, Sq, D), out_dtype),
        grid_spec=pltpu.PrefetchScalarGridSpec(
            num_scalar_prefetch=0,
            grid=(B // block_b,),
            in_specs=[
                pl.BlockSpec((block_b, Sq, D), lambda b: (b, 0, 0)),    # x
                pl.BlockSpec((block_b, Skv, D), lambda b: (b, 0, 0)),   # context
                const(heads, D, hd), const(heads, 1, hd),               # Wq, bq
                const(heads, D, hd), const(heads, 1, hd),               # Wk, bk
                const(heads, D, hd), const(heads, 1, hd),               # Wv, bv
                const(heads, hd, D), const(1, D),                       # Wo, bo
            ],
            out_specs=pl.BlockSpec((block_b, Sq, D), lambda b: (b, 0, 0)),
        ),
        compiler_params=pltpu.CompilerParams(
            dimension_semantics=("parallel",),
            vmem_limit_bytes=32 * 1024 * 1024),
    )(x_bf, ctx_bf,
      prep['wq'], prep['bq'], prep['wk'], prep['bk'],
      prep['wv'], prep['bv'], prep['wo'], prep['bo'])


def _reference(x, context, params, *, heads):
    """Pure-JAX f32 reference mirroring the PyTorch forward (eval mode)."""
    B, Sq, D = x.shape
    _, Skv, _ = context.shape
    hd = D // heads
    scale = hd ** (-0.5)

    q = x @ params['wq'].T + params['bq']
    k = context @ params['wk'].T + params['bk']
    v = context @ params['wv'].T + params['bv']

    q = q.reshape(B, Sq, heads, hd).transpose(0, 2, 1, 3)
    k = k.reshape(B, Skv, heads, hd).transpose(0, 2, 1, 3)
    v = v.reshape(B, Skv, heads, hd).transpose(0, 2, 1, 3)

    dots = jnp.einsum('bhqd,bhkd->bhqk', q, k) * scale
    attn = jax.nn.softmax(dots, axis=-1)
    out = jnp.einsum('bhqk,bhkd->bhqd', attn, v)
    out = out.transpose(0, 2, 1, 3).reshape(B, Sq, D)
    return out @ params['wo'].T + params['bo']


if __name__ == "__main__":
    B, Sq, Skv, D, heads = 2, 8, 8, 32, 8

    key = jax.random.PRNGKey(0)
    keys = jax.random.split(key, 10)

    # Deterministic synthetic parameters (shapes match nn.Linear(dim, dim)).
    params = {
        'wq': jax.random.normal(keys[0], (D, D), jnp.float32) * 0.1,
        'bq': jax.random.normal(keys[1], (D,), jnp.float32) * 0.1,
        'wk': jax.random.normal(keys[2], (D, D), jnp.float32) * 0.1,
        'bk': jax.random.normal(keys[3], (D,), jnp.float32) * 0.1,
        'wv': jax.random.normal(keys[4], (D, D), jnp.float32) * 0.1,
        'bv': jax.random.normal(keys[5], (D,), jnp.float32) * 0.1,
        'wo': jax.random.normal(keys[6], (D, D), jnp.float32) * 0.1,
        'bo': jax.random.normal(keys[7], (D,), jnp.float32) * 0.1,
    }

    x = jax.random.normal(keys[8], (B, Sq, D), jnp.float32)
    context = jax.random.normal(keys[9], (B, Skv, D), jnp.float32)

    # One-time parameter prep (off the hot path).
    prep = prepare_cross_attention_params(params, heads=heads)

    out = cross_attention_layer(x, context, prep, heads=heads)
    out = jax.block_until_ready(out)

    ref = _reference(x, context, params, heads=heads)
    assert out.shape == (B, Sq, D)
    # bf16 matmuls + approx reciprocal => loosen tolerance vs the f32 reference.
    assert jnp.allclose(out, ref, atol=3e-2, rtol=3e-2), "mismatch vs reference"

    print("KERNEL_OK")
</pallas_src>

<mosaic_0001>
module attributes {stable_mosaic.version = 11 : i64} {
  func.func @_cross_attn_kernel(%arg0: i32, %arg1: memref<2x8x32xbf16, #tpu.memory_space<vmem>>, %arg2: memref<2x8x32xbf16, #tpu.memory_space<vmem>>, %arg3: memref<8x32x4xbf16, #tpu.memory_space<vmem>>, %arg4: memref<8x1x4xf32, #tpu.memory_space<vmem>>, %arg5: memref<8x32x4xbf16, #tpu.memory_space<vmem>>, %arg6: memref<8x1x4xf32, #tpu.memory_space<vmem>>, %arg7: memref<8x32x4xbf16, #tpu.memory_space<vmem>>, %arg8: memref<8x1x4xf32, #tpu.memory_space<vmem>>, %arg9: memref<8x4x32xbf16, #tpu.memory_space<vmem>>, %arg10: memref<1x32xf32, #tpu.memory_space<vmem>>, %arg11: memref<2x8x32xf32, #tpu.memory_space<vmem>>) attributes {dimension_semantics = [#tpu.dimension_semantics<parallel>], iteration_bounds = array<i64: 1>, scalar_prefetch = 0 : i64, scratch_operands = 0 : i64, tpu.core_type = #tpu.core_type<tc>, window_params = [{transform_indices = @transform_0, window_bounds = array<i64: 2, 8, 32>}, {transform_indices = @transform_1, window_bounds = array<i64: 2, 8, 32>}, {pipeline_mode = #tpu.pipeline_mode<synchronous>, transform_indices = @transform_2, window_bounds = array<i64: 8, 32, 4>}, {pipeline_mode = #tpu.pipeline_mode<synchronous>, transform_indices = @transform_3, window_bounds = array<i64: 8, 1, 4>}, {pipeline_mode = #tpu.pipeline_mode<synchronous>, transform_indices = @transform_4, window_bounds = array<i64: 8, 32, 4>}, {pipeline_mode = #tpu.pipeline_mode<synchronous>, transform_indices = @transform_5, window_bounds = array<i64: 8, 1, 4>}, {pipeline_mode = #tpu.pipeline_mode<synchronous>, transform_indices = @transform_6, window_bounds = array<i64: 8, 32, 4>}, {pipeline_mode = #tpu.pipeline_mode<synchronous>, transform_indices = @transform_7, window_bounds = array<i64: 8, 1, 4>}, {pipeline_mode = #tpu.pipeline_mode<synchronous>, transform_indices = @transform_8, window_bounds = array<i64: 8, 4, 32>}, {pipeline_mode = #tpu.pipeline_mode<synchronous>, transform_indices = @transform_9, window_bounds = array<i64: 1, 32>}, {transform_indices = @transform_10, window_bounds = array<i64: 2, 8, 32>}]} {
    %c0 = arith.constant 0 : index
    %c0_0 = arith.constant 0 : index
    %c0_1 = arith.constant 0 : index
    %0 = vector.load %arg3[%c0, %c0_0, %c0_1] : memref<8x32x4xbf16, #tpu.memory_space<vmem>>, vector<8x32x4xbf16>
    %c0_2 = arith.constant 0 : index
    %c0_3 = arith.constant 0 : index
    %c0_4 = arith.constant 0 : index
    %1 = vector.load %arg5[%c0_2, %c0_3, %c0_4] : memref<8x32x4xbf16, #tpu.memory_space<vmem>>, vector<8x32x4xbf16>
    %c0_5 = arith.constant 0 : index
    %c0_6 = arith.constant 0 : index
    %c0_7 = arith.constant 0 : index
    %2 = vector.load %arg7[%c0_5, %c0_6, %c0_7] : memref<8x32x4xbf16, #tpu.memory_space<vmem>>, vector<8x32x4xbf16>
    %c0_8 = arith.constant 0 : index
    %c0_9 = arith.constant 0 : index
    %c0_10 = arith.constant 0 : index
    %3 = vector.load %arg9[%c0_8, %c0_9, %c0_10] : memref<8x4x32xbf16, #tpu.memory_space<vmem>>, vector<8x4x32xbf16>
    %c0_11 = arith.constant 0 : index
    %c0_12 = arith.constant 0 : index
    %c0_13 = arith.constant 0 : index
    %4 = vector.load %arg4[%c0_11, %c0_12, %c0_13] : memref<8x1x4xf32, #tpu.memory_space<vmem>>, vector<8x1x4xf32>
    %c0_14 = arith.constant 0 : index
    %c0_15 = arith.constant 0 : index
    %c0_16 = arith.constant 0 : index
    %5 = vector.load %arg6[%c0_14, %c0_15, %c0_16] : memref<8x1x4xf32, #tpu.memory_space<vmem>>, vector<8x1x4xf32>
    %c0_17 = arith.constant 0 : index
    %c0_18 = arith.constant 0 : index
    %c0_19 = arith.constant 0 : index
    %6 = vector.load %arg8[%c0_17, %c0_18, %c0_19] : memref<8x1x4xf32, #tpu.memory_space<vmem>>, vector<8x1x4xf32>
    %c0_20 = arith.constant 0 : index
    %c0_21 = arith.constant 0 : index
    %7 = vector.load %arg10[%c0_20, %c0_21] : memref<1x32xf32, #tpu.memory_space<vmem>>, vector<1x32xf32>
    %c0_22 = arith.constant 0 : index
    %c0_23 = arith.constant 0 : index
    %c0_24 = arith.constant 0 : index
    %8 = vector.load %arg1[%c0_22, %c0_23, %c0_24] : memref<2x8x32xbf16, #tpu.memory_space<vmem>>, vector<1x8x32xbf16>
    %9 = vector.shape_cast %8 : vector<1x8x32xbf16> to vector<8x32xbf16>
    %10 = vector.shape_cast %9 : vector<8x32xbf16> to vector<1x8x32xbf16>
    %11 = vector.broadcast %10 : vector<1x8x32xbf16> to vector<8x8x32xbf16>
    %c0_25 = arith.constant 0 : index
    %c0_26 = arith.constant 0 : index
    %c0_27 = arith.constant 0 : index
    %12 = vector.load %arg2[%c0_25, %c0_26, %c0_27] : memref<2x8x32xbf16, #tpu.memory_space<vmem>>, vector<1x8x32xbf16>
    %13 = vector.shape_cast %12 : vector<1x8x32xbf16> to vector<8x32xbf16>
    %14 = vector.shape_cast %13 : vector<8x32xbf16> to vector<1x8x32xbf16>
    %15 = vector.broadcast %14 : vector<1x8x32xbf16> to vector<8x8x32xbf16>
    "tpu.trace_start"() <{level = 10 : i32, message = "hse,hed->hsd"}> : () -> ()
    %cst = arith.constant dense<0.000000e+00> : vector<8x8x4xf32>
    %16 = tpu.matmul %11, %0, %cst {dimension_numbers = #tpu.dot_dimension_numbers<[2], [1], [1], [2], [0, 0, 0, 1, 1, 2], [0], [0]>} : vector<8x8x32xbf16>, vector<8x32x4xbf16>, vector<8x8x4xf32> -> vector<8x8x4xf32>
    "tpu.trace_stop"() : () -> ()
    %17 = vector.broadcast %4 : vector<8x1x4xf32> to vector<8x8x4xf32>
    %18 = arith.addf %16, %17 : vector<8x8x4xf32>
    "tpu.trace_start"() <{level = 10 : i32, message = "hse,hed->hsd"}> : () -> ()
    %cst_28 = arith.constant dense<0.000000e+00> : vector<8x8x4xf32>
    %19 = tpu.matmul %15, %1, %cst_28 {dimension_numbers = #tpu.dot_dimension_numbers<[2], [1], [1], [2], [0, 0, 0, 1, 1, 2], [0], [0]>} : vector<8x8x32xbf16>, vector<8x32x4xbf16>, vector<8x8x4xf32> -> vector<8x8x4xf32>
    "tpu.trace_stop"() : () -> ()
    %20 = vector.broadcast %5 : vector<8x1x4xf32> to vector<8x8x4xf32>
    %21 = arith.addf %19, %20 : vector<8x8x4xf32>
    "tpu.trace_start"() <{level = 10 : i32, message = "hse,hed->hsd"}> : () -> ()
    %cst_29 = arith.constant dense<0.000000e+00> : vector<8x8x4xf32>
    %22 = tpu.matmul %15, %2, %cst_29 {dimension_numbers = #tpu.dot_dimension_numbers<[2], [1], [1], [2], [0, 0, 0, 1, 1, 2], [0], [0]>} : vector<8x8x32xbf16>, vector<8x32x4xbf16>, vector<8x8x4xf32> -> vector<8x8x4xf32>
    "tpu.trace_stop"() : () -> ()
    %23 = vector.broadcast %6 : vector<8x1x4xf32> to vector<8x8x4xf32>
    %24 = arith.addf %22, %23 : vector<8x8x4xf32>
    %25 = arith.truncf %18 : vector<8x8x4xf32> to vector<8x8x4xbf16>
    %26 = arith.truncf %21 : vector<8x8x4xf32> to vector<8x8x4xbf16>
    "tpu.trace_start"() <{level = 10 : i32, message = "hqd,hkd->hqk"}> : () -> ()
    %cst_30 = arith.constant dense<0.000000e+00> : vector<8x8x8xf32>
    %27 = tpu.matmul %25, %26, %cst_30 {dimension_numbers = #tpu.dot_dimension_numbers<[2], [2], [1], [1], [0, 0, 0, 1, 1, 1], [0], [0]>} : vector<8x8x4xbf16>, vector<8x8x4xbf16>, vector<8x8x8xf32> -> vector<8x8x8xf32>
    "tpu.trace_stop"() : () -> ()
    %cst_31 = arith.constant dense<0xFF800000> : vector<8x8xf32>
    %28 = vector.multi_reduction <maximumf>, %27, %cst_31 [2] : vector<8x8x8xf32> to vector<8x8xf32>
    %29 = vector.shape_cast %28 : vector<8x8xf32> to vector<8x8x1xf32>
    %30 = vector.broadcast %29 : vector<8x8x1xf32> to vector<8x8x8xf32>
    %31 = arith.subf %27, %30 : vector<8x8x8xf32>
    %32 = math.exp %31 : vector<8x8x8xf32>
    %cst_32 = arith.constant dense<0.000000e+00> : vector<8x8xf32>
    %33 = vector.multi_reduction <add>, %32, %cst_32 [2] : vector<8x8x8xf32> to vector<8x8xf32>
    %34 = vector.shape_cast %33 : vector<8x8xf32> to vector<8x8x1xf32>
    %35 = tpu.reciprocal %34 {approx = true} : vector<8x8x1xf32> -> vector<8x8x1xf32>
    %36 = vector.broadcast %35 : vector<8x8x1xf32> to vector<8x8x8xf32>
    %37 = arith.mulf %32, %36 : vector<8x8x8xf32>
    %38 = arith.truncf %37 : vector<8x8x8xf32> to vector<8x8x8xbf16>
    %39 = arith.truncf %24 : vector<8x8x4xf32> to vector<8x8x4xbf16>
    "tpu.trace_start"() <{level = 10 : i32, message = "hqk,hkd->hqd"}> : () -> ()
    %cst_33 = arith.constant dense<0.000000e+00> : vector<8x8x4xf32>
    %40 = tpu.matmul %38, %39, %cst_33 {dimension_numbers = #tpu.dot_dimension_numbers<[2], [1], [1], [2], [0, 0, 0, 1, 1, 2], [0], [0]>} : vector<8x8x8xbf16>, vector<8x8x4xbf16>, vector<8x8x4xf32> -> vector<8x8x4xf32>
    "tpu.trace_stop"() : () -> ()
    %41 = arith.truncf %40 : vector<8x8x4xf32> to vector<8x8x4xbf16>
    "tpu.trace_start"() <{level = 10 : i32, message = "hqd,hde->hqe"}> : () -> ()
    %cst_34 = arith.constant dense<0.000000e+00> : vector<8x8x32xf32>
    %42 = tpu.matmul %41, %3, %cst_34 {dimension_numbers = #tpu.dot_dimension_numbers<[2], [1], [1], [2], [0, 0, 0, 1, 1, 2], [0], [0]>} : vector<8x8x4xbf16>, vector<8x4x32xbf16>, vector<8x8x32xf32> -> vector<8x8x32xf32>
    "tpu.trace_stop"() : () -> ()
    %cst_35 = arith.constant dense<0.000000e+00> : vector<8x32xf32>
    %43 = vector.multi_reduction <add>, %42, %cst_35 [0] : vector<8x8x32xf32> to vector<8x32xf32>
    %44 = vector.broadcast %7 : vector<1x32xf32> to vector<8x32xf32>
    %45 = arith.addf %43, %44 : vector<8x32xf32>
    %c0_36 = arith.constant 0 : index
    %c0_37 = arith.constant 0 : index
    %c0_38 = arith.constant 0 : index
    %46 = vector.load %arg11[%c0_36, %c0_37, %c0_38] : memref<2x8x32xf32, #tpu.memory_space<vmem>>, vector<1x8x32xf32>
    %47 = vector.shape_cast %46 : vector<1x8x32xf32> to vector<8x32xf32>
    %48 = vector.shape_cast %45 : vector<8x32xf32> to vector<1x8x32xf32>
    tpu.vector_store %arg11[%c0_36, %c0_37, %c0_38], %48 {strides = array<i32>} : memref<2x8x32xf32, #tpu.memory_space<vmem>>, vector<1x8x32xf32>,
    %c1 = arith.constant 1 : index
    %c0_39 = arith.constant 0 : index
    %c0_40 = arith.constant 0 : index
    %49 = vector.load %arg1[%c1, %c0_39, %c0_40] : memref<2x8x32xbf16, #tpu.memory_space<vmem>>, vector<1x8x32xbf16>
    %50 = vector.shape_cast %49 : vector<1x8x32xbf16> to vector<8x32xbf16>
    %51 = vector.shape_cast %50 : vector<8x32xbf16> to vector<1x8x32xbf16>
    %52 = vector.broadcast %51 : vector<1x8x32xbf16> to vector<8x8x32xbf16>
    %c1_41 = arith.constant 1 : index
    %c0_42 = arith.constant 0 : index
    %c0_43 = arith.constant 0 : index
    %53 = vector.load %arg2[%c1_41, %c0_42, %c0_43] : memref<2x8x32xbf16, #tpu.memory_space<vmem>>, vector<1x8x32xbf16>
    %54 = vector.shape_cast %53 : vector<1x8x32xbf16> to vector<8x32xbf16>
    %55 = vector.shape_cast %54 : vector<8x32xbf16> to vector<1x8x32xbf16>
    %56 = vector.broadcast %55 : vector<1x8x32xbf16> to vector<8x8x32xbf16>
    "tpu.trace_start"() <{level = 10 : i32, message = "hse,hed->hsd"}> : () -> ()
    %cst_44 = arith.constant dense<0.000000e+00> : vector<8x8x4xf32>
    %57 = tpu.matmul %52, %0, %cst_44 {dimension_numbers = #tpu.dot_dimension_numbers<[2], [1], [1], [2], [0, 0, 0, 1, 1, 2], [0], [0]>} : vector<8x8x32xbf16>, vector<8x32x4xbf16>, vector<8x8x4xf32> -> vector<8x8x4xf32>
    "tpu.trace_stop"() : () -> ()
    %58 = vector.broadcast %4 : vector<8x1x4xf32> to vector<8x8x4xf32>
    %59 = arith.addf %57, %58 : vector<8x8x4xf32>
    "tpu.trace_start"() <{level = 10 : i32, message = "hse,hed->hsd"}> : () -> ()
    %cst_45 = arith.constant dense<0.000000e+00> : vector<8x8x4xf32>
    %60 = tpu.matmul %56, %1, %cst_45 {dimension_numbers = #tpu.dot_dimension_numbers<[2], [1], [1], [2], [0, 0, 0, 1, 1, 2], [0], [0]>} : vector<8x8x32xbf16>, vector<8x32x4xbf16>, vector<8x8x4xf32> -> vector<8x8x4xf32>
    "tpu.trace_stop"() : () -> ()
    %61 = vector.broadcast %5 : vector<8x1x4xf32> to vector<8x8x4xf32>
    %62 = arith.addf %60, %61 : vector<8x8x4xf32>
    "tpu.trace_start"() <{level = 10 : i32, message = "hse,hed->hsd"}> : () -> ()
    %cst_46 = arith.constant dense<0.000000e+00> : vector<8x8x4xf32>
    %63 = tpu.matmul %56, %2, %cst_46 {dimension_numbers = #tpu.dot_dimension_numbers<[2], [1], [1], [2], [0, 0, 0, 1, 1, 2], [0], [0]>} : vector<8x8x32xbf16>, vector<8x32x4xbf16>, vector<8x8x4xf32> -> vector<8x8x4xf32>
    "tpu.trace_stop"() : () -> ()
    %64 = vector.broadcast %6 : vector<8x1x4xf32> to vector<8x8x4xf32>
    %65 = arith.addf %63, %64 : vector<8x8x4xf32>
    %66 = arith.truncf %59 : vector<8x8x4xf32> to vector<8x8x4xbf16>
    %67 = arith.truncf %62 : vector<8x8x4xf32> to vector<8x8x4xbf16>
    "tpu.trace_start"() <{level = 10 : i32, message = "hqd,hkd->hqk"}> : () -> ()
    %cst_47 = arith.constant dense<0.000000e+00> : vector<8x8x8xf32>
    %68 = tpu.matmul %66, %67, %cst_47 {dimension_numbers = #tpu.dot_dimension_numbers<[2], [2], [1], [1], [0, 0, 0, 1, 1, 1], [0], [0]>} : vector<8x8x4xbf16>, vector<8x8x4xbf16>, vector<8x8x8xf32> -> vector<8x8x8xf32>
    "tpu.trace_stop"() : () -> ()
    %cst_48 = arith.constant dense<0xFF800000> : vector<8x8xf32>
    %69 = vector.multi_reduction <maximumf>, %68, %cst_48 [2] : vector<8x8x8xf32> to vector<8x8xf32>
    %70 = vector.shape_cast %69 : vector<8x8xf32> to vector<8x8x1xf32>
    %71 = vector.broadcast %70 : vector<8x8x1xf32> to vector<8x8x8xf32>
    %72 = arith.subf %68, %71 : vector<8x8x8xf32>
    %73 = math.exp %72 : vector<8x8x8xf32>
    %cst_49 = arith.constant dense<0.000000e+00> : vector<8x8xf32>
    %74 = vector.multi_reduction <add>, %73, %cst_49 [2] : vector<8x8x8xf32> to vector<8x8xf32>
    %75 = vector.shape_cast %74 : vector<8x8xf32> to vector<8x8x1xf32>
    %76 = tpu.reciprocal %75 {approx = true} : vector<8x8x1xf32> -> vector<8x8x1xf32>
    %77 = vector.broadcast %76 : vector<8x8x1xf32> to vector<8x8x8xf32>
    %78 = arith.mulf %73, %77 : vector<8x8x8xf32>
    %79 = arith.truncf %78 : vector<8x8x8xf32> to vector<8x8x8xbf16>
    %80 = arith.truncf %65 : vector<8x8x4xf32> to vector<8x8x4xbf16>
    "tpu.trace_start"() <{level = 10 : i32, message = "hqk,hkd->hqd"}> : () -> ()
    %cst_50 = arith.constant dense<0.000000e+00> : vector<8x8x4xf32>
    %81 = tpu.matmul %79, %80, %cst_50 {dimension_numbers = #tpu.dot_dimension_numbers<[2], [1], [1], [2], [0, 0, 0, 1, 1, 2], [0], [0]>} : vector<8x8x8xbf16>, vector<8x8x4xbf16>, vector<8x8x4xf32> -> vector<8x8x4xf32>
    "tpu.trace_stop"() : () -> ()
    %82 = arith.truncf %81 : vector<8x8x4xf32> to vector<8x8x4xbf16>
    "tpu.trace_start"() <{level = 10 : i32, message = "hqd,hde->hqe"}> : () -> ()
    %cst_51 = arith.constant dense<0.000000e+00> : vector<8x8x32xf32>
    %83 = tpu.matmul %82, %3, %cst_51 {dimension_numbers = #tpu.dot_dimension_numbers<[2], [1], [1], [2], [0, 0, 0, 1, 1, 2], [0], [0]>} : vector<8x8x4xbf16>, vector<8x4x32xbf16>, vector<8x8x32xf32> -> vector<8x8x32xf32>
    "tpu.trace_stop"() : () -> ()
    %cst_52 = arith.constant dense<0.000000e+00> : vector<8x32xf32>
    %84 = vector.multi_reduction <add>, %83, %cst_52 [0] : vector<8x8x32xf32> to vector<8x32xf32>
    %85 = vector.broadcast %7 : vector<1x32xf32> to vector<8x32xf32>
    %86 = arith.addf %84, %85 : vector<8x32xf32>
    %c1_53 = arith.constant 1 : index
    %c0_54 = arith.constant 0 : index
    %c0_55 = arith.constant 0 : index
    %87 = vector.load %arg11[%c1_53, %c0_54, %c0_55] : memref<2x8x32xf32, #tpu.memory_space<vmem>>, vector<1x8x32xf32>
    %88 = vector.shape_cast %87 : vector<1x8x32xf32> to vector<8x32xf32>
    %89 = vector.shape_cast %86 : vector<8x32xf32> to vector<1x8x32xf32>
    tpu.vector_store %arg11[%c1_53, %c0_54, %c0_55], %89 {strides = array<i32>} : memref<2x8x32xf32, #tpu.memory_space<vmem>>, vector<1x8x32xf32>,
    return
  }
  func.func @transform_0(%arg0: i32) -> (i32, i32, i32) {
    %c0_i32 = arith.constant 0 : i32
    %c0_i32_0 = arith.constant 0 : i32
    %c0_i32_1 = arith.constant 0 : i32
    return %arg0, %c0_i32, %c0_i32_0 : i32, i32, i32
  }
  func.func @transform_1(%arg0: i32) -> (i32, i32, i32) {
    %c0_i32 = arith.constant 0 : i32
    %c0_i32_0 = arith.constant 0 : i32
    %c0_i32_1 = arith.constant 0 : i32
    return %arg0, %c0_i32, %c0_i32_0 : i32, i32, i32
  }
  func.func @transform_2(%arg0: i32) -> (i32, i32, i32) {
    %c0_i32 = arith.constant 0 : i32
    %c0_i32_0 = arith.constant 0 : i32
    %c0_i32_1 = arith.constant 0 : i32
    %c0_i32_2 = arith.constant 0 : i32
    return %c0_i32, %c0_i32_0, %c0_i32_1 : i32, i32, i32
  }
  func.func @transform_3(%arg0: i32) -> (i32, i32, i32) {
    %c0_i32 = arith.constant 0 : i32
    %c0_i32_0 = arith.constant 0 : i32
    %c0_i32_1 = arith.constant 0 : i32
    %c0_i32_2 = arith.constant 0 : i32
    return %c0_i32, %c0_i32_0, %c0_i32_1 : i32, i32, i32
  }
  func.func @transform_4(%arg0: i32) -> (i32, i32, i32) {
    %c0_i32 = arith.constant 0 : i32
    %c0_i32_0 = arith.constant 0 : i32
    %c0_i32_1 = arith.constant 0 : i32
    %c0_i32_2 = arith.constant 0 : i32
    return %c0_i32, %c0_i32_0, %c0_i32_1 : i32, i32, i32
  }
  func.func @transform_5(%arg0: i32) -> (i32, i32, i32) {
    %c0_i32 = arith.constant 0 : i32
    %c0_i32_0 = arith.constant 0 : i32
    %c0_i32_1 = arith.constant 0 : i32
    %c0_i32_2 = arith.constant 0 : i32
    return %c0_i32, %c0_i32_0, %c0_i32_1 : i32, i32, i32
  }
  func.func @transform_6(%arg0: i32) -> (i32, i32, i32) {
    %c0_i32 = arith.constant 0 : i32
    %c0_i32_0 = arith.constant 0 : i32
    %c0_i32_1 = arith.constant 0 : i32
    %c0_i32_2 = arith.constant 0 : i32
    return %c0_i32, %c0_i32_0, %c0_i32_1 : i32, i32, i32
  }
  func.func @transform_7(%arg0: i32) -> (i32, i32, i32) {
    %c0_i32 = arith.constant 0 : i32
    %c0_i32_0 = arith.constant 0 : i32
    %c0_i32_1 = arith.constant 0 : i32
    %c0_i32_2 = arith.constant 0 : i32
    return %c0_i32, %c0_i32_0, %c0_i32_1 : i32, i32, i32
  }
  func.func @transform_8(%arg0: i32) -> (i32, i32, i32) {
    %c0_i32 = arith.constant 0 : i32
    %c0_i32_0 = arith.constant 0 : i32
    %c0_i32_1 = arith.constant 0 : i32
    %c0_i32_2 = arith.constant 0 : i32
    return %c0_i32, %c0_i32_0, %c0_i32_1 : i32, i32, i32
  }
  func.func @transform_9(%arg0: i32) -> (i32, i32) {
    %c0_i32 = arith.constant 0 : i32
    %c0_i32_0 = arith.constant 0 : i32
    %c0_i32_1 = arith.constant 0 : i32
    return %c0_i32, %c0_i32_0 : i32, i32
  }
  func.func @transform_10(%arg0: i32) -> (i32, i32, i32) {
    %c0_i32 = arith.constant 0 : i32
    %c0_i32_0 = arith.constant 0 : i32
    %c0_i32_1 = arith.constant 0 : i32
    return %arg0, %c0_i32, %c0_i32_0 : i32, i32, i32
  }
}

</mosaic_0001>

<bundles_post_ra>
// kernel: tpu_custom_call.1
= control target key start
LH: loop header
LB: loop body
LE: loop exit
PB: predicated region body
PF: predicated region fallthrough
CT: control target
= control target key end

     0   :  { %v6332_v1 = vmov 0.0   ;;  %vm6333_vm0 = vmmov 0   ;;  %vm228_vm1 = vcmask 261120   ;;  %s7572_s0 = inlined_call_operand.vmem [shape: bf16[2,8,32], index: 0, kind: input, shape index: {}]   ;;  %s7573_s1 = inlined_call_operand.vmem [shape: bf16[2,8,32], index: 1, kind: input, shape index: {}]   ;;  %s7574_s2 = inlined_call_operand.vmem [shape: bf16[8,32,4], index: 2, kind: input, shape index: {}]   ;;  %s7575_s3 = inlined_call_operand.vmem [shape: f32[8,1,4], index: 3, kind: input, shape index: {}]   ;;  %s7576_s4 = inlined_call_operand.vmem [shape: bf16[8,32,4], index: 4, kind: input, shape index: {}]   ;;  %s7577_s5 = inlined_call_operand.vmem [shape: f32[8,1,4], index: 5, kind: input, shape index: {}]   ;;  %s7578_s6 = inlined_call_operand.vmem [shape: bf16[8,32,4], index: 6, kind: input, shape index: {}]   ;;  %s7579_s7 = inlined_call_operand.vmem [shape: f32[8,1,4], index: 7, kind: input, shape index: {}]   ;;  %s7580_s8 = inlined_call_operand.vmem [shape: bf16[8,4,32], index: 8, kind: input, shape index: {}]   ;;  %s7581_s9 = inlined_call_operand.vmem [shape: f32[1,32], index: 9, kind: input, shape index: {}]   ;;  %s7582_s10 = inlined_call_operand.hbm [shape: f32[2,8,32], index: 10, kind: output, shape index: {}]  }
   0x1   :  { %v6126_v0 = vld [vmem:[%s7574_s2 + $0x8] sm:$0xff]   ;;  %5449 = vmatprep.subr.bf16.mxu0 %v6332_v1  ;;  %5457 = vmatprep.subr.bf16.mxu1 %v6332_v1  ;;  %v6127_v2 = vld [vmem:[%s7574_s2 + $0x18] sm:$0xff]   ;;  %v6128_v3 = vld [vmem:[%s7574_s2] sm:$0xff]  }
   0x2   :  { %5450 = vmatpush3.bf16.msra.mxu0 %v6126_v0  ;;  %5453 = vmatprep.mubr.msk.bf16.mxu0 %vm6333_vm0, %v6332_v1  ;;  %v6129_v4 = vld [vmem:[%s7574_s2 + $0x10] sm:$0xff]   ;;  %v166_v5 = vld [vmem:[%s7572_s0] sm:$0xf]  ;;  %v6130_v6 = vld [vmem:[%s7574_s2 + $0x28] sm:$0xff]  }
   0x3   :  { %5458 = vmatpush3.bf16.msra.mxu1 %v6127_v2  ;;  %5451 = vmatprep.subr.bf16.mxu0 %v6332_v1  ;;  %v6131_v7 = vld [vmem:[%s7574_s2 + $0x38] sm:$0xff]   ;;  %v6132_v8 = vld [vmem:[%s7574_s2 + $0x20] sm:$0xff]   ;;  %v6133_v9 = vld [vmem:[%s7574_s2 + $0x30] sm:$0xff]  }
   0x4   :  { %5459 = vmatprep.subr.bf16.mxu1 %v6332_v1  ;;  %5461 = vmatprep.mubr.msk.bf16.mxu1 %vm6333_vm0, %v6332_v1  ;;  %v6134_v10 = vld [vmem:[%s7574_s2 + $0x48] sm:$0xff]   ;;  %v6135_v11 = vld [vmem:[%s7574_s2 + $0x58] sm:$0xff]   ;;  %v6136_v12 = vld [vmem:[%s7574_s2 + $0x40] sm:$0xff]  }
   0x5   :  { %v6137_v13 = vld [vmem:[%s7574_s2 + $0x50] sm:$0xff]   ;;  %v6138_v14 = vld [vmem:[%s7574_s2 + $0x68] sm:$0xff]   ;;  %v6139_v15 = vld [vmem:[%s7574_s2 + $0x78] sm:$0xff]  }
   0x6   :  { %5452 = vmatpush3.bf16.msra.mxu0 %v6128_v3  ;;  %v6140_v16 = vld [vmem:[%s7574_s2 + $0x60] sm:$0xff]   ;;  %v6141_v17 = vld [vmem:[%s7574_s2 + $0x70] sm:$0xff]   ;;  %v6142_v18 = vld [vmem:[%s7576_s4 + $0x8] sm:$0xff]  }
   0x7   :  { %5460 = vmatpush3.bf16.msra.mxu1 %v6129_v4  ;;  %5465 = vmatprep.subr.bf16.mxu0 %v6332_v1  ;;  %v6143_v19 = vld [vmem:[%s7576_s4 + $0x18] sm:$0xff]   ;;  %v6144_v20 = vld [vmem:[%s7576_s4] sm:$0xff]   ;;  %v6145_v21 = vld [vmem:[%s7576_s4 + $0x10] sm:$0xff]  }
   0x8   :  { %5473 = vmatprep.subr.bf16.mxu1 %v6332_v1  ;;  %v6504_v22 = vld [vmem:[%s7573_s1] sm:$0xf]  ;;  %v6146_v23 = vld [vmem:[%s7576_s4 + $0x28] sm:$0xff]   ;;  %v6147_v24 = vld [vmem:[%s7576_s4 + $0x38] sm:$0xff]  }
   0x9   :  { %5454 = vmatmul.mubr.msk.bf16.vlgmr.msra.gmra.mxu0 %vm228_vm1, %v166_v5  ;;  %v6148_v25 = vld [vmem:[%s7576_s4 + $0x20] sm:$0xff]   ;;  %v6149_v26 = vld [vmem:[%s7576_s4 + $0x30] sm:$0xff]  }
   0xa   :  { %5462 = vmatmul.mubr.msk.bf16.vlgmr.msra.gmra.mxu1 %vm228_vm1, %v166_v5  ;;  %5466 = vmatpush3.bf16.msra.mxu0 %v6130_v6 }
   0xb   :  { %5474 = vmatpush3.bf16.msra.mxu1 %v6131_v7  ;;  %5467 = vmatprep.subr.bf16.mxu0 %v6332_v1 }
   0xc   :  { %5475 = vmatprep.subr.bf16.mxu1 %v6332_v1  ;;  %5469 = vmatprep.mubr.msk.bf16.mxu0 %vm6333_vm0, %v6332_v1 }
   0xd   :  { %5477 = vmatprep.mubr.msk.bf16.mxu1 %vm6333_vm0, %v6332_v1 }
   0xe   :  { %5468 = vmatpush3.bf16.msra.mxu0 %v6132_v8 }
   0xf   :  { %5476 = vmatpush3.bf16.msra.mxu1 %v6133_v9  ;;  %5481 = vmatprep.subr.bf16.mxu0 %v6332_v1 }
  0x10   :  { %5489 = vmatprep.subr.bf16.mxu1 %v6332_v1 }
  0x11   :  { %5470 = vmatmul.mubr.msk.bf16.vlgmr.msra.gmra.mxu0 %vm228_vm1, %v166_v5 }
  0x12   :  { %5478 = vmatmul.mubr.msk.bf16.vlgmr.msra.gmra.mxu1 %vm228_vm1, %v166_v5  ;;  %5482 = vmatpush3.bf16.msra.mxu0 %v6134_v10 }
  0x13   :  { %5490 = vmatpush3.bf16.msra.mxu1 %v6135_v11  ;;  %5483 = vmatprep.subr.bf16.mxu0 %v6332_v1 }
  0x14   :  { %5491 = vmatprep.subr.bf16.mxu1 %v6332_v1  ;;  %5485 = vmatprep.mubr.msk.bf16.mxu0 %vm6333_vm0, %v6332_v1 }
  0x15   :  { %5493 = vmatprep.mubr.msk.bf16.mxu1 %vm6333_vm0, %v6332_v1 }
  0x16   :  { %5484 = vmatpush3.bf16.msra.mxu0 %v6136_v12 }
  0x17   :  { %5492 = vmatpush3.bf16.msra.mxu1 %v6137_v13  ;;  %5497 = vmatprep.subr.bf16.mxu0 %v6332_v1 }
  0x18   :  { %5505 = vmatprep.subr.bf16.mxu1 %v6332_v1 }
  0x19   :  { %5486 = vmatmul.mubr.msk.bf16.vlgmr.msra.gmra.mxu0 %vm228_vm1, %v166_v5 }
  0x1a   :  { %5494 = vmatmul.mubr.msk.bf16.vlgmr.msra.gmra.mxu1 %vm228_vm1, %v166_v5  ;;  %5498 = vmatpush3.bf16.msra.mxu0 %v6138_v14 }
  0x1b   :  { %5506 = vmatpush3.bf16.msra.mxu1 %v6139_v15  ;;  %5499 = vmatprep.subr.bf16.mxu0 %v6332_v1 }
  0x1c   :  { %5507 = vmatprep.subr.bf16.mxu1 %v6332_v1  ;;  %5501 = vmatprep.mubr.msk.bf16.mxu0 %vm6333_vm0, %v6332_v1 }
  0x1d   :  { %5509 = vmatprep.mubr.msk.bf16.mxu1 %vm6333_vm0, %v6332_v1 }
  0x1e   :  { %5500 = vmatpush3.bf16.msra.mxu0 %v6140_v16 }
  0x1f   :  { %5508 = vmatpush3.bf16.msra.mxu1 %v6141_v17  ;;  %5513 = vmatprep.subr.bf16.mxu0 %v6332_v1 }
  0x20   :  { %5521 = vmatprep.subr.bf16.mxu1 %v6332_v1 }
  0x21   :  { %5502 = vmatmul.mubr.msk.bf16.vlgmr.msra.gmra.mxu0 %vm228_vm1, %v166_v5 }
  0x22   :  { %5510 = vmatmul.mubr.msk.bf16.vlgmr.msra.gmra.mxu1 %vm228_vm1, %v166_v5  ;;  %5514 = vmatpush3.bf16.msra.mxu0 %v6142_v18 }
  0x23   :  { %5522 = vmatpush3.bf16.msra.mxu1 %v6143_v19  ;;  %5515 = vmatprep.subr.bf16.mxu0 %v6332_v1 }
  0x24   :  { %5523 = vmatprep.subr.bf16.mxu1 %v6332_v1  ;;  %5517 = vmatprep.mubr.msk.bf16.mxu0 %vm6333_vm0, %v6332_v1 }
  0x25   :  { %5525 = vmatprep.mubr.msk.bf16.mxu1 %vm6333_vm0, %v6332_v1 }
  0x26   :  { %5516 = vmatpush3.bf16.msra.mxu0 %v6144_v20 }
  0x27   :  { %5524 = vmatpush3.bf16.msra.mxu1 %v6145_v21  ;;  %5529 = vmatprep.subr.bf16.mxu0 %v6332_v1 }
  0x28   :  { %5537 = vmatprep.subr.bf16.mxu1 %v6332_v1 }
  0x29   :  { %5518 = vmatmul.mubr.msk.bf16.vlgmr.msra.gmra.mxu0 %vm228_vm1, %v6504_v22 }
  0x2a   :  { %5526 = vmatmul.mubr.msk.bf16.vlgmr.msra.gmra.mxu1 %vm228_vm1, %v6504_v22  ;;  %5530 = vmatpush3.bf16.msra.mxu0 %v6146_v23 }
  0x2b   :  { %5538 = vmatpush3.bf16.msra.mxu1 %v6147_v24  ;;  %5531 = vmatprep.subr.bf16.mxu0 %v6332_v1 }
  0x2c   :  { %15 = vsyncpa [#allocation3], 0  ;;  %5539 = vmatprep.subr.bf16.mxu1 %v6332_v1  ;;  %5533 = vmatprep.mubr.msk.bf16.mxu0 %vm6333_vm0, %v6332_v1  ;;  %v6150_v27 = vld [vmem:[%s7576_s4 + $0x48] sm:$0xff]   ;;  %v6151_v28 = vld [vmem:[%s7576_s4 + $0x58] sm:$0xff]   ;;  %vm1583_vm2 = vcmask 31744   ;;  %vm2060_vm3 = vcmask 1043456  }
  0x2d   :  { %5541 = vmatprep.mubr.msk.bf16.mxu1 %vm6333_vm0, %v6332_v1  ;;  %v6152_v29 = vld [vmem:[%s7576_s4 + $0x40] sm:$0xff]   ;;  %v6153_v30 = vld [vmem:[%s7576_s4 + $0x50] sm:$0xff]   ;;  %v6154_v31 = vld [vmem:[%s7576_s4 + $0x68] sm:$0xff]   ;;  %vm1952_vm4 = vcmask 64512   ;;  %vm2437_vm5 = vcmask 1041408  }
  0x2e   :  { %5532 = vmatpush3.bf16.msra.mxu0 %v6148_v25  ;;  %v6155_v32 = vld [vmem:[%s7576_s4 + $0x78] sm:$0xff]   ;;  %v6156_v33 = vld [vmem:[%s7576_s4 + $0x60] sm:$0xff]   ;;  %v6157_v34 = vld [vmem:[%s7576_s4 + $0x70] sm:$0xff]  }
  0x2f   :  { %5540 = vmatpush3.bf16.msra.mxu1 %v6149_v26  ;;  %5545 = vmatprep.subr.bf16.mxu0 %v6332_v1  ;;  %v6158_v35 = vld [vmem:[%s7578_s6 + $0x8] sm:$0xff]   ;;  %v6159_v36 = vld [vmem:[%s7578_s6] sm:$0xff]   ;;  %v6160_v37 = vld [vmem:[%s7578_s6 + $0x18] sm:$0xff]  }
  0x30   :  { %5553 = vmatprep.subr.bf16.mxu1 %v6332_v1  ;;  %v6161_v38 = vld [vmem:[%s7578_s6 + $0x10] sm:$0xff]   ;;  %v6162_v39 = vld [vmem:[%s7578_s6 + $0x28] sm:$0xff]   ;;  %v6163_v40 = vld [vmem:[%s7578_s6 + $0x20] sm:$0xff]  }
  0x31   :  { %5534 = vmatmul.mubr.msk.bf16.vlgmr.msra.gmra.mxu0 %vm228_vm1, %v6504_v22  ;;  %v6164_v41 = vld [vmem:[%s7578_s6 + $0x38] sm:$0xff]   ;;  %v6165_v42 = vld [vmem:[%s7578_s6 + $0x30] sm:$0xff]   ;;  %v6166_v43 = vld [vmem:[%s7578_s6 + $0x48] sm:$0xff]  }
  0x32   :  { %5542 = vmatmul.mubr.msk.bf16.vlgmr.msra.gmra.mxu1 %vm228_vm1, %v6504_v22  ;;  %5546 = vmatpush3.bf16.msra.mxu0 %v6150_v27  ;;  %v6167_v44 = vld [vmem:[%s7578_s6 + $0x40] sm:$0xff]   ;;  %v6168_v45 = vld [vmem:[%s7578_s6 + $0x58] sm:$0xff]   ;;  %v6169_v46 = vld [vmem:[%s7578_s6 + $0x50] sm:$0xff]  }
  0x33   :  { %5554 = vmatpush3.bf16.msra.mxu1 %v6151_v28  ;;  %5547 = vmatprep.subr.bf16.mxu0 %v6332_v1  ;;  %v6170_v47 = vld [vmem:[%s7578_s6 + $0x68] sm:$0xff]   ;;  %v6171_v48 = vld [vmem:[%s7578_s6 + $0x60] sm:$0xff]   ;;  %v6172_v49 = vld [vmem:[%s7578_s6 + $0x78] sm:$0xff]  }
  0x34   :  { %5555 = vmatprep.subr.bf16.mxu1 %v6332_v1  ;;  %5549 = vmatprep.mubr.msk.bf16.mxu0 %vm6333_vm0, %v6332_v1  ;;  %v6173_v50 = vld [vmem:[%s7578_s6 + $0x70] sm:$0xff]   ;;  %v5070_v19 = vld [vmem:[%s7577_s5] ss:$0 sm:$0xff]  ;;  %v5071_v21 = vld [vmem:[%s7577_s5 + $0x1] ss:$0 sm:$0xff] }
  0x35   :  { %5557 = vmatprep.mubr.msk.bf16.mxu1 %vm6333_vm0, %v6332_v1 }
  0x36   :  { %5548 = vmatpush3.bf16.msra.mxu0 %v6152_v29  ;;  %v5038_v29 = vld [vmem:[%s7575_s3] ss:$0 sm:$0xff] }
  0x37   :  { %5556 = vmatpush3.bf16.msra.mxu1 %v6153_v30  ;;  %5561 = vmatprep.subr.bf16.mxu0 %v6332_v1 }
  0x38   :  { %5569 = vmatprep.subr.bf16.mxu1 %v6332_v1 }
  0x39   :  { %5550 = vmatmul.mubr.msk.bf16.vlgmr.msra.gmra.mxu0 %vm228_vm1, %v6504_v22 }
  0x3a   :  { %5558 = vmatmul.mubr.msk.bf16.vlgmr.msra.gmra.mxu1 %vm228_vm1, %v6504_v22  ;;  %5562 = vmatpush3.bf16.msra.mxu0 %v6154_v31 }
  0x3b   :  { %5570 = vmatpush3.bf16.msra.mxu1 %v6155_v32  ;;  %5563 = vmatprep.subr.bf16.mxu0 %v6332_v1  ;;  %v5039_v32 = vld [vmem:[%s7575_s3 + $0x1] ss:$0 sm:$0xff] }
  0x3c   :  { %5571 = vmatprep.subr.bf16.mxu1 %v6332_v1  ;;  %5565 = vmatprep.mubr.msk.bf16.mxu0 %vm6333_vm0, %v6332_v1 }
  0x3d   :  { %5573 = vmatprep.mubr.msk.bf16.mxu1 %vm6333_vm0, %v6332_v1 }
  0x3e   :  { %5564 = vmatpush3.bf16.msra.mxu0 %v6156_v33 }
  0x3f   :  { %5572 = vmatpush3.bf16.msra.mxu1 %v6157_v34  ;;  %5577 = vmatprep.subr.bf16.mxu0 %v6332_v1 }
  0x40   :  { %5585 = vmatprep.subr.bf16.mxu1 %v6332_v1 }
  0x41   :  { %5566 = vmatmul.mubr.msk.bf16.vlgmr.msra.gmra.mxu0 %vm228_vm1, %v6504_v22 }
  0x42   :  { %5574 = vmatmul.mubr.msk.bf16.vlgmr.msra.gmra.mxu1 %vm228_vm1, %v6504_v22  ;;  %5581 = vmatprep.mubr.msk.bf16.mxu0 %vm6333_vm0, %v6332_v1 }
  0x43   :  { %5589 = vmatprep.mubr.msk.bf16.mxu1 %vm6333_vm0, %v6332_v1  ;;  %5578 = vmatpush3.bf16.msra.mxu0 %v6158_v35 }
  0x44   :  { %5579 = vmatprep.subr.bf16.mxu0 %v6332_v1  ;;  %5586 = vmatpush3.bf16.msra.mxu1 %v6160_v37  ;;  %v5072_v37 = vld [vmem:[%s7577_s5 + $0x2] ss:$0 sm:$0xff] }
  0x45   :  { %5587 = vmatprep.subr.bf16.mxu1 %v6332_v1 }
  0x47   :  { %5580 = vmatpush3.bf16.msra.mxu0 %v6159_v36 }
  0x48   :  { %5593 = vmatprep.subr.bf16.mxu0 %v6332_v1  ;;  %5588 = vmatpush3.bf16.msra.mxu1 %v6161_v38 }
  0x49   :  { %5601 = vmatprep.subr.bf16.mxu1 %v6332_v1 }
  0x4a   :  { %5582 = vmatmul.mubr.msk.bf16.vlgmr.msra.gmra.mxu0 %vm228_vm1, %v6504_v22 }
  0x4b   :  { %5594 = vmatpush3.bf16.msra.mxu0 %v6162_v39  ;;  %5597 = vmatprep.mubr.msk.bf16.mxu0 %vm6333_vm0, %v6332_v1 }
  0x4c   :  { %5595 = vmatprep.subr.bf16.mxu0 %v6332_v1  ;;  %5590 = vmatmul.mubr.msk.bf16.vlgmr.msra.gmra.mxu1 %vm228_vm1, %v6504_v22 }
  0x4d   :  { %5602 = vmatpush3.bf16.msra.mxu1 %v6164_v41  ;;  %5605 = vmatprep.mubr.msk.bf16.mxu1 %vm6333_vm0, %v6332_v1 }
  0x4e   :  { %5603 = vmatprep.subr.bf16.mxu1 %v6332_v1 }
  0x4f   :  { %5596 = vmatpush3.bf16.msra.mxu0 %v6163_v40  ;;  %v5073_v40 = vld [vmem:[%s7577_s5 + $0x3] ss:$0 sm:$0xff] }
  0x50   :  { %5609 = vmatprep.subr.bf16.mxu0 %v6332_v1 }
  0x51   :  { %5604 = vmatpush3.bf16.msra.mxu1 %v6165_v42 }
  0x52   :  { %5598 = vmatmul.mubr.msk.bf16.vlgmr.msra.gmra.mxu0 %vm228_vm1, %v6504_v22  ;;  %5617 = vmatprep.subr.bf16.mxu1 %v6332_v1 }
  0x53   :  { %5610 = vmatpush3.bf16.msra.mxu0 %v6166_v43  ;;  %5613 = vmatprep.mubr.msk.bf16.mxu0 %vm6333_vm0, %v6332_v1 }
  0x54   :  { %5611 = vmatprep.subr.bf16.mxu0 %v6332_v1  ;;  %5606 = vmatmul.mubr.msk.bf16.vlgmr.msra.gmra.mxu1 %vm228_vm1, %v6504_v22 }
  0x55   :  { %5618 = vmatpush3.bf16.msra.mxu1 %v6168_v45  ;;  %5621 = vmatprep.mubr.msk.bf16.mxu1 %vm6333_vm0, %v6332_v1 }
  0x56   :  { %5619 = vmatprep.subr.bf16.mxu1 %v6332_v1 }
  0x57   :  { %5612 = vmatpush3.bf16.msra.mxu0 %v6167_v44 }
  0x58   :  { %5625 = vmatprep.subr.bf16.mxu0 %v6332_v1 }
  0x59   :  { %5620 = vmatpush3.bf16.msra.mxu1 %v6169_v46 }
  0x5a   :  { %5614 = vmatmul.mubr.msk.bf16.vlgmr.msra.gmra.mxu0 %vm228_vm1, %v6504_v22  ;;  %5633 = vmatprep.subr.bf16.mxu1 %v6332_v1 }
  0x5b   :  { %5626 = vmatpush3.bf16.msra.mxu0 %v6170_v47  ;;  %5629 = vmatprep.mubr.msk.bf16.mxu0 %vm6333_vm0, %v6332_v1 }
  0x5c   :  { %5627 = vmatprep.subr.bf16.mxu0 %v6332_v1  ;;  %5622 = vmatmul.mubr.msk.bf16.vlgmr.msra.gmra.mxu1 %vm228_vm1, %v6504_v22 }
  0x5d   :  { %5634 = vmatpush3.bf16.msra.mxu1 %v6172_v49  ;;  %5637 = vmatprep.mubr.msk.bf16.mxu1 %vm6333_vm0, %v6332_v1 }
  0x5e   :  { %5635 = vmatprep.subr.bf16.mxu1 %v6332_v1 }
  0x5f   :  { %5628 = vmatpush3.bf16.msra.mxu0 %v6171_v48 }
  0x60   :  { %5641 = vmatprep.subr.bf16.mxu0 %v6332_v1 }
  0x61   :  { %5636 = vmatpush3.bf16.msra.mxu1 %v6173_v50 }
  0x62   :  { %5630 = vmatmul.mubr.msk.bf16.vlgmr.msra.gmra.mxu0 %vm228_vm1, %v6504_v22  ;;  %5647 = vmatprep.subr.bf16.mxu1 %v6332_v1 }
  0x63   :  { %5643 = vmatprep.mubr.msk.bf16.mxu0 %vm6333_vm0, %v6332_v1 }
  0x64   :  { %5638 = vmatmul.mubr.msk.bf16.vlgmr.msra.gmra.mxu1 %vm228_vm1, %v6504_v22 }
  0x65   :  { %5649 = vmatprep.mubr.msk.bf16.mxu1 %vm6333_vm0, %v6332_v1 }
  0xc9   :  { %v266_v51 = vpop.f32.mrf.mxu0 }
  0xca   :  { %v318_v52 = vpop.f32.mrf.mxu1  ;;  %v267_v38 = vadd.f32 %v5038_v29, %v266_v51  ;;  %v5040_v51 = vld [vmem:[%s7575_s3 + $0x2] ss:$0 sm:$0xff] }
  0xcb   :  { %v5455_v53 = vpop.f32.mrf.mxu0  ;;  %v319_v41 = vadd.f32 %v5039_v32, %v318_v52  ;;  %v5041_v52 = vld [vmem:[%s7575_s3 + $0x3] ss:$0 sm:$0xff] }
  0xcc   :  { %v5463_v54 = vpop.f32.mrf.mxu1  ;;  %v1567_v47 = vpack.c.bf16 %v267_v38, %v267_v38 }
  0xcd   :  { %v269_v55 = vpop.f32.mrf.mxu0  ;;  %v1568_v50 = vpack.c.bf16 %v319_v41, %v319_v41 }
  0xce   :  { %v321_v56 = vpop.f32.mrf.mxu1 }
  0xcf   :  { %v5456_v57 = vpop.f32.mrf.mxu0 }
  0xd0   :  { %v5464_v58 = vpop.f32.mrf.mxu1 }
  0xd1   :  { %v6686_v59 = vpop.f32.mrf.mxu0 }
  0xd2   :  { %v6688_v60 = vpop.f32.mrf.mxu1 }
  0xd3   :  { %v5471_v61 = vpop.f32.mrf.mxu0 }
  0xd4   :  { %v5479_v62 = vpop.f32.mrf.mxu1  ;;  %v5074_v61 = vld [vmem:[%s7577_s5 + $0x4] ss:$0 sm:$0xff] }
  0xd5   :  { %v373_v63 = vpop.f32.mrf.mxu0  ;;  %v371_v62 = vadd.f32 %v5040_v51, %v6686_v59 }
  0xd6   :  { %v425_v0 = vpop.f32.mrf.mxu1 }
  0xd7   :  { %v5472_v2 = vpop.f32.mrf.mxu0  ;;  %v5075_v0 = vld [vmem:[%s7577_s5 + $0x5] ss:$0 sm:$0xff] }
  0xd8   :  { %v5480_v3 = vpop.f32.mrf.mxu1  ;;  %v423_v2 = vadd.f32 %v5041_v52, %v6688_v60  ;;  %v5042_v60 = vld [vmem:[%s7575_s3 + $0x4] ss:$0 sm:$0xff] }
  0xd9   :  { %v6690_v4 = vpop.f32.mrf.mxu0 }
  0xda   :  { %v6692_v5 = vpop.f32.mrf.mxu1 }
  0xdb   :  { %v5487_v6 = vpop.f32.mrf.mxu0 }
  0xdc   :  { %v5495_v7 = vpop.f32.mrf.mxu1 }
  0xdd   :  { %v477_v8 = vpop.f32.mrf.mxu0 }
  0xde   :  { %v529_v9 = vpop.f32.mrf.mxu1 }
  0xdf   :  { %v5488_v10 = vpop.f32.mrf.mxu0  ;;  %v1569_v9 = vpack.c.bf16 %v371_v62, %v371_v62 }
  0xe0   :  { %v5496_v11 = vpop.f32.mrf.mxu1 }
  0xe1   :  { %v6694_v12 = vpop.f32.mrf.mxu0 }
  0xe2   :  { %v6696_v13 = vpop.f32.mrf.mxu1 }
  0xe3   :  { %v5503_v14 = vpop.f32.mrf.mxu0 }
  0xe4   :  { %v5511_v15 = vpop.f32.mrf.mxu1  ;;  %v1570_v14 = vpack.c.bf16 %v423_v2, %v423_v2 }
  0xe5   :  { %v581_v16 = vpop.f32.mrf.mxu0 }
  0xe6   :  { %v633_v17 = vpop.f32.mrf.mxu1 }
  0xe7   :  { %v5504_v18 = vpop.f32.mrf.mxu0  ;;  %v5043_v17 = vld [vmem:[%s7575_s3 + $0x5] ss:$0 sm:$0xff] }
  0xe8   :  { %v5512_v20 = vpop.f32.mrf.mxu1 }
  0xe9   :  { %v733_v22 = vpop.f32.mrf.mxu0 }
  0xea   :  { %v734_v23 = vadd.f32 %v5070_v19, %v733_v22  ;;  %v785_v24 = vpop.f32.mrf.mxu1  ;;  %v5076_v22 = vld [vmem:[%s7577_s5 + $0x6] ss:$0 sm:$0xff] }
  0xeb   :  { %v786_v25 = vadd.f32 %v5071_v21, %v785_v24  ;;  %v5519_v26 = vpop.f32.mrf.mxu0 }
  0xec   :  { %v1575_v27 = vpack.c.bf16 %v734_v23, %v734_v23  ;;  %v5527_v28 = vpop.f32.mrf.mxu1  ;;  %v475_v23 = vadd.f32 %v5042_v60, %v6690_v4  ;;  %v527_v26 = vadd.f32 %v5043_v17, %v6692_v5  ;;  %v5044_v5 = vld [vmem:[%s7575_s3 + $0x6] ss:$0 sm:$0xff] }
  0xed   :  { %v1576_v30 = vpack.c.bf16 %v786_v25, %v786_v25  ;;  %v736_v31 = vpop.f32.mrf.mxu0  ;;  %v5077_v25 = vld [vmem:[%s7577_s5 + $0x7] ss:$0 sm:$0xff] }
  0xee   :  { %v1588_v33 = vsel %vm1583_vm2, %v1575_v27, 0  ;;  %v788_v34 = vpop.f32.mrf.mxu1  ;;  %v1571_v31 = vpack.c.bf16 %v475_v23, %v475_v23 }
  0xef   :  { %v1634_v35 = vsel %vm1583_vm2, %v1576_v30, 0  ;;  %v5520_v36 = vpop.f32.mrf.mxu0  ;;  %5642 = vmatpush3.bf16.xpose.msra.mxu0 %v1588_v33  ;;  %v1572_v34 = vpack.c.bf16 %v527_v26, %v527_v26 }
  0xf0   :  { %v5528_v39 = vpop.f32.mrf.mxu1  ;;  %5648 = vmatpush3.bf16.xpose.msra.mxu1 %v1634_v35  ;;  %5653 = vmatprep.subr.bf16.mxu0 %v6332_v1 }
  0xf1   :  { %v837_v42 = vpop.f32.mrf.mxu0  ;;  %5659 = vmatprep.subr.bf16.mxu1 %v6332_v1 }
  0xf2   :  { %v838_v43 = vadd.f32 %v5072_v37, %v837_v42  ;;  %v889_v44 = vpop.f32.mrf.mxu1  ;;  %v5045_v37 = vld [vmem:[%s7575_s3 + $0x7] ss:$0 sm:$0xff]  ;;  %v579_v42 = vadd.f32 %v5044_v5, %v6694_v12  ;;  %v5102_v12 = vld [vmem:[%s7579_s7] ss:$0 sm:$0xff] }
  0xf3   :  { %v890_v45 = vadd.f32 %v5073_v40, %v889_v44  ;;  %v5535_v46 = vpop.f32.mrf.mxu0  ;;  %v631_v44 = vadd.f32 %v5045_v37, %v6696_v13 }
  0xf4   :  { %v1577_v48 = vpack.c.bf16 %v838_v43, %v838_v43  ;;  %v5543_v49 = vpop.f32.mrf.mxu1 }
  0xf5   :  { %v1578_v53 = vpack.c.bf16 %v890_v45, %v890_v45  ;;  %v840_v54 = vpop.f32.mrf.mxu0  ;;  %v1573_v45 = vpack.c.bf16 %v579_v42, %v579_v42  ;;  %v1574_v46 = vpack.c.bf16 %v631_v44, %v631_v44  ;;  %v5103_v49 = vld [vmem:[%s7579_s7 + $0x1] ss:$0 sm:$0xff] }
  0xf6   :  { %v1680_v55 = vsel %vm1583_vm2, %v1577_v48, 0  ;;  %v892_v56 = vpop.f32.mrf.mxu1  ;;  %5644 = vmatmul.mubr.msk.bf16.vlgmr.msra.gmra.mxu0 %vm1583_vm2, %v1567_v47 }
  0xf7   :  { %v1726_v57 = vsel %vm1583_vm2, %v1578_v53, 0  ;;  %5650 = vmatmul.mubr.msk.bf16.vlgmr.msra.gmra.mxu1 %vm1583_vm2, %v1568_v50  ;;  %v5536_v58 = vpop.f32.mrf.mxu0  ;;  %5654 = vmatpush3.bf16.xpose.msra.mxu0 %v1680_v55 }
  0xf8   :  { %v5544_v63 = vpop.f32.mrf.mxu1  ;;  %5660 = vmatpush3.bf16.xpose.msra.mxu1 %v1726_v57  ;;  %5655 = vmatprep.mubr.msk.bf16.mxu0 %vm6333_vm0, %v6332_v1 }
  0xf9   :  { %v941_v3 = vpop.f32.mrf.mxu0  ;;  %5661 = vmatprep.mubr.msk.bf16.mxu1 %vm6333_vm0, %v6332_v1  ;;  %5665 = vmatprep.subr.bf16.mxu0 %v6332_v1 }
  0xfa   :  { %v942_v6 = vadd.f32 %v5074_v61, %v941_v3  ;;  %v993_v7 = vpop.f32.mrf.mxu1  ;;  %5671 = vmatprep.subr.bf16.mxu1 %v6332_v1 }
  0xfb   :  { %v994_v59 = vadd.f32 %v5075_v0, %v993_v7  ;;  %v5551_v8 = vpop.f32.mrf.mxu0 }
  0xfc   :  { %v1579_v10 = vpack.c.bf16 %v942_v6, %v942_v6  ;;  %v5559_v11 = vpop.f32.mrf.mxu1 }
  0xfd   :  { %v1580_v15 = vpack.c.bf16 %v994_v59, %v994_v59  ;;  %v944_v16 = vpop.f32.mrf.mxu0 }
  0xfe   :  { %v1772_v18 = vsel %vm1583_vm2, %v1579_v10, 0  ;;  %v996_v19 = vpop.f32.mrf.mxu1  ;;  %5656 = vmatmul.mubr.msk.bf16.vlgmr.msra.gmra.mxu0 %vm1583_vm2, %v1569_v9 }
  0xff   :  { %v1818_v20 = vsel %vm1583_vm2, %v1580_v15, 0  ;;  %5662 = vmatmul.mubr.msk.bf16.vlgmr.msra.gmra.mxu1 %vm1583_vm2, %v1570_v14  ;;  %v5552_v21 = vpop.f32.mrf.mxu0  ;;  %5666 = vmatpush3.bf16.xpose.msra.mxu0 %v1772_v18 }
 0x100   :  { %v5560_v24 = vpop.f32.mrf.mxu1  ;;  %5672 = vmatpush3.bf16.xpose.msra.mxu1 %v1818_v20  ;;  %5667 = vmatprep.mubr.msk.bf16.mxu0 %vm6333_vm0, %v6332_v1 }
 0x101   :  { %v1045_v27 = vpop.f32.mrf.mxu0  ;;  %5673 = vmatprep.mubr.msk.bf16.mxu1 %vm6333_vm0, %v6332_v1  ;;  %5677 = vmatprep.subr.bf16.mxu0 %v6332_v1 }
 0x102   :  { %v1046_v28 = vadd.f32 %v5076_v22, %v1045_v27  ;;  %v1097_v29 = vpop.f32.mrf.mxu1  ;;  %5683 = vmatprep.subr.bf16.mxu1 %v6332_v1 }
 0x103   :  { %v1098_v4 = vadd.f32 %v5077_v25, %v1097_v29  ;;  %v5567_v30 = vpop.f32.mrf.mxu0 }
 0x104   :  { %v1581_v32 = vpack.c.bf16 %v1046_v28, %v1046_v28  ;;  %v5575_v33 = vpop.f32.mrf.mxu1 }
 0x105   :  { %v1582_v35 = vpack.c.bf16 %v1098_v4, %v1098_v4  ;;  %v1048_v36 = vpop.f32.mrf.mxu0 }
 0x106   :  { %v1864_v38 = vsel %vm1583_vm2, %v1581_v32, 0  ;;  %v1100_v39 = vpop.f32.mrf.mxu1  ;;  %5668 = vmatmul.mubr.msk.bf16.vlgmr.msra.gmra.mxu0 %vm1583_vm2, %v1571_v31 }
 0x107   :  { %v1910_v40 = vsel %vm1583_vm2, %v1582_v35, 0  ;;  %5674 = vmatmul.mubr.msk.bf16.vlgmr.msra.gmra.mxu1 %vm1583_vm2, %v1572_v34  ;;  %v5568_v41 = vpop.f32.mrf.mxu0  ;;  %5678 = vmatpush3.bf16.xpose.msra.mxu0 %v1864_v38 }
 0x108   :  { %v5576_v43 = vpop.f32.mrf.mxu1  ;;  %5684 = vmatpush3.bf16.xpose.msra.mxu1 %v1910_v40  ;;  %5679 = vmatprep.mubr.msk.bf16.mxu0 %vm6333_vm0, %v6332_v1 }
 0x109   :  { %5685 = vmatprep.mubr.msk.bf16.mxu1 %vm6333_vm0, %v6332_v1  ;;  %5689 = vmatprep.subr.bf16.mxu0 %v6332_v1 }
 0x10a   :  { %5695 = vmatprep.subr.bf16.mxu1 %v6332_v1  ;;  %v1197_v13 = vpop.f32.mrf.mxu0 }
 0x10b   :  { %v1198_v47 = vadd.f32 %v5102_v12, %v1197_v13 }
 0x10c   :  { %v5583_v48 = vpop.f32.mrf.mxu0  ;;  %v1249_v53 = vpop.f32.mrf.mxu1 }
 0x10d   :  { %v2049_v50 = vpack.c.bf16 %v1198_v47, %v1198_v47  ;;  %v1250_v52 = vadd.f32 %v5103_v49, %v1249_v53 }
 0x10e   :  { %5680 = vmatmul.mubr.msk.bf16.vlgmr.msra.gmra.mxu0 %vm1583_vm2, %v1573_v45  ;;  %v1200_v51 = vpop.f32.mrf.mxu0  ;;  %v5591_v56 = vpop.f32.mrf.mxu1 }
 0x10f   :  { %5686 = vmatmul.mubr.msk.bf16.vlgmr.msra.gmra.mxu1 %vm1583_vm2, %v1574_v46  ;;  %5691 = vmatprep.mubr.msk.bf16.mxu0 %vm6333_vm0, %v6332_v1  ;;  %v2062_v54 = vsel %vm2060_vm3, %v2049_v50, 0  ;;  %v2050_v57 = vpack.c.bf16 %v1250_v52, %v1250_v52 }
 0x110   :  { %5697 = vmatprep.mubr.msk.bf16.mxu1 %vm6333_vm0, %v6332_v1  ;;  %v5584_v55 = vpop.f32.mrf.mxu0  ;;  %5690 = vmatpush3.bf16.msra.mxu0 %v2062_v54  ;;  %v1252_v58 = vpop.f32.mrf.mxu1 }
 0x111   :  { %5701 = vmatprep.subr.bf16.mxu0 %v6332_v1  ;;  %v2108_v62 = vsel %vm2060_vm3, %v2050_v57, 0 }
 0x112   :  { %v6800_v61 = vpop.f32.mrf.mxu0  ;;  %v5592_v63 = vpop.f32.mrf.mxu1  ;;  %5696 = vmatpush3.bf16.msra.mxu1 %v2108_v62 }
 0x113   :  { %5707 = vmatprep.subr.bf16.mxu1 %v6332_v1 }
 0x114   :  { %v5599_v0 = vpop.f32.mrf.mxu0  ;;  %v6804_v3 = vpop.f32.mrf.mxu1 }
 0x116   :  { %v1304_v2 = vpop.f32.mrf.mxu0  ;;  %v5607_v7 = vpop.f32.mrf.mxu1 }
 0x118   :  { %v5600_v6 = vpop.f32.mrf.mxu0  ;;  %v1356_v59 = vpop.f32.mrf.mxu1 }
 0x11a   :  { %v6806_v8 = vpop.f32.mrf.mxu0  ;;  %v5608_v9 = vpop.f32.mrf.mxu1 }
 0x11c   :  { %v5615_v10 = vpop.f32.mrf.mxu0  ;;  %v6808_v14 = vpop.f32.mrf.mxu1 }
 0x11e   :  { %v1408_v11 = vpop.f32.mrf.mxu0  ;;  %v5623_v15 = vpop.f32.mrf.mxu1 }
 0x120   :  { %v5616_v60 = vpop.f32.mrf.mxu0  ;;  %v1460_v16 = vpop.f32.mrf.mxu1 }
 0x122   :  { %v6810_v17 = vpop.f32.mrf.mxu0  ;;  %v5624_v18 = vpop.f32.mrf.mxu1 }
 0x124   :  { %v5631_v19 = vpop.f32.mrf.mxu0  ;;  %v6812_v21 = vpop.f32.mrf.mxu1 }
 0x126   :  { %v1512_v20 = vpop.f32.mrf.mxu0  ;;  %v5639_v23 = vpop.f32.mrf.mxu1 }
 0x128   :  { %v5632_v22 = vpop.f32.mrf.mxu0  ;;  %v1564_v24 = vpop.f32.mrf.mxu1 }
 0x12a   :  { %v5640_v25 = vpop.f32.mrf.mxu1 }
 0x1b6   :  { %v1624_v26 = vpop.f32.mrf.mxu0 }
 0x1b7   :  { %v1670_v27 = vpop.f32.mrf.mxu1  ;;  %v1953_v28 = vsel %vm1952_vm4, %v1624_v26, -inf }
 0x1b8   :  { %1954 = vmax.xlane.f32.xlu0 %v1953_v28  ;;  %v5645_v29 = vpop.f32.mrf.mxu0  ;;  %v1956_v32 = vsel %vm1952_vm4, %v1670_v27, -inf }
 0x1b9   :  { %v5651_v4 = vpop.f32.mrf.mxu1 }
 0x1ba   :  { %v1627_v30 = vpop.f32.mrf.mxu0 }
 0x1bb   :  { %v1673_v31 = vpop.f32.mrf.mxu1 }
 0x1bc   :  { %1957 = vmax.xlane.f32.xlu0 %v1956_v32  ;;  %v5646_v33 = vpop.f32.mrf.mxu0 }
 0x1bd   :  { %v5652_v34 = vpop.f32.mrf.mxu1 }
 0x1be   :  { %v1716_v5 = vpop.f32.mrf.mxu0 }
 0x1bf   :  { %v1762_v35 = vpop.f32.mrf.mxu1  ;;  %v1959_v36 = vsel %vm1952_vm4, %v1716_v5, -inf }
 0x1c0   :  { %1960 = vmax.xlane.f32.xlu1 %v1959_v36  ;;  %v5657_v37 = vpop.f32.mrf.mxu0  ;;  %v1962_v41 = vsel %vm1952_vm4, %v1762_v35, -inf }
 0x1c1   :  { %v5663_v38 = vpop.f32.mrf.mxu1 }
 0x1c2   :  { %v1719_v39 = vpop.f32.mrf.mxu0 }
 0x1c3   :  { %v1765_v40 = vpop.f32.mrf.mxu1 }
 0x1c4   :  { %1963 = vmax.xlane.f32.xlu1 %v1962_v41  ;;  %v5658_v42 = vpop.f32.mrf.mxu0 }
 0x1c5   :  { %v5664_v43 = vpop.f32.mrf.mxu1 }
 0x1c6   :  { %v1808_v44 = vpop.f32.mrf.mxu0 }
 0x1c7   :  { %v1854_v45 = vpop.f32.mrf.mxu1  ;;  %v1965_v46 = vsel %vm1952_vm4, %v1808_v44, -inf }
 0x1c8   :  { %v1968_v12 = vsel %vm1952_vm4, %v1854_v45, -inf  ;;  %1966 = vmax.xlane.f32.xlu0 %v1965_v46  ;;  %v5669_v13 = vpop.f32.mrf.mxu0 }
 0x1c9   :  { %v5675_v47 = vpop.f32.mrf.mxu1  ;;  %1969 = vmax.xlane.f32.xlu1 %v1968_v12 }
 0x1ca   :  { %v1811_v48 = vpop.f32.mrf.mxu0  ;;  %v5104_v47 = vld [vmem:[%s7579_s7 + $0x2] ss:$0 sm:$0xff] }
 0x1cb   :  { %v1857_v49 = vpop.f32.mrf.mxu1 }
 0x1cc   :  { %v5670_v50 = vpop.f32.mrf.mxu0  ;;  %v1302_v49 = vadd.f32 %v5104_v47, %v6800_v61  ;;  %v136_v47 = vld [vmem:[%s7580_s8 + $0x6] sm:$0x3] }
 0x1cd   :  { %v5676_v51 = vpop.f32.mrf.mxu1  ;;  %v5105_v50 = vld [vmem:[%s7579_s7 + $0x3] ss:$0 sm:$0xff] }
 0x1ce   :  { %v1900_v53 = vpop.f32.mrf.mxu0 }
 0x1cf   :  { %v1946_v54 = vpop.f32.mrf.mxu1  ;;  %v1971_v52 = vsel %vm1952_vm4, %v1900_v53, -inf }
 0x1d0   :  { %v1974_v55 = vsel %vm1952_vm4, %v1946_v54, -inf  ;;  %1972 = vmax.xlane.f32.xlu0 %v1971_v52  ;;  %v5681_v56 = vpop.f32.mrf.mxu0  ;;  %v1354_v52 = vadd.f32 %v5105_v50, %v6804_v3  ;;  %v5107_v3 = vld [vmem:[%s7579_s7 + $0x5] ss:$0 sm:$0xff] }
 0x1d1   :  { %v5687_v57 = vpop.f32.mrf.mxu1  ;;  %1975 = vmax.xlane.f32.xlu1 %v1974_v55  ;;  %v5106_v56 = vld [vmem:[%s7579_s7 + $0x4] ss:$0 sm:$0xff] }
 0x1d2   :  { %v1903_v58 = vpop.f32.mrf.mxu0 }
 0x1d3   :  { %v1949_v62 = vpop.f32.mrf.mxu1 }
 0x1d4   :  { %v5682_v63 = vpop.f32.mrf.mxu0 }
 0x1d5   :  { %v5688_v0 = vpop.f32.mrf.mxu1 }
 0x1d6   :  { %v2052_v0 = vpack.c.bf16 %v1354_v52, %v1354_v52  ;;  %v137_v52 = vld [vmem:[%s7580_s8 + $0x8] sm:$0x3] }
 0x241   :  { %v1955_v2 = vpop.xlane.xlu0 %1954 }
 0x242   :  { %v1977_v6 = vsub.f32 %v1624_v26, %v1955_v2  ;;  %v1406_v2 = vadd.f32 %v5106_v56, %v6806_v8  ;;  %v1458_v8 = vadd.f32 %v5107_v3, %v6808_v14 }
 0x244   :  { %v1985_v7 = vmul.f32 1.442695, %v1977_v6 }
 0x245   :  { %v1958_v59 = vpop.xlane.xlu0 %1957 }
 0x246   :  { %6174 = vpow2.f32 %v1985_v7  ;;  %v1978_v9 = vsub.f32 %v1670_v27, %v1958_v59 }
 0x248   :  { %v1987_v10 = vmul.f32 1.442695, %v1978_v9  ;;  %v2200_v9 = vsel %vm2060_vm3, %v2052_v0, 0 }
 0x249   :  { %v1961_v11 = vpop.xlane.xlu1 %1960 }
 0x24a   :  { %6176 = vpow2.f32 %v1987_v10  ;;  %v1979_v60 = vsub.f32 %v1716_v5, %v1961_v11  ;;  %v2053_v10 = vpack.c.bf16 %v1406_v2, %v1406_v2 }
 0x24c   :  { %v1989_v15 = vmul.f32 1.442695, %v1979_v60  ;;  %v5108_v60 = vld [vmem:[%s7579_s7 + $0x6] ss:$0 sm:$0xff]  ;;  %v2246_v14 = vsel %vm2060_vm3, %v2053_v10, 0 }
 0x24d   :  { %v1964_v16 = vpop.xlane.xlu1 %1963 }
 0x24e   :  { %6178 = vpow2.f32 %v1989_v15  ;;  %v1980_v18 = vsub.f32 %v1762_v35, %v1964_v16 }
 0x250   :  { %v1991_v19 = vmul.f32 1.442695, %v1980_v18 }
 0x251   :  { %v1967_v20 = vpop.xlane.xlu0 %1966 }
 0x252   :  { %6180 = vpow2.f32 %v1991_v19  ;;  %v1970_v22 = vpop.xlane.xlu1 %1969  ;;  %v1981_v23 = vsub.f32 %v1808_v44, %v1967_v20  ;;  %v2054_v20 = vpack.c.bf16 %v1458_v8, %v1458_v8 }
 0x253   :  { %v6175_v24 = vpop.eup %6174  ;;  %v1982_v25 = vsub.f32 %v1854_v45, %v1970_v22  ;;  %v1510_v22 = vadd.f32 %v5108_v60, %v6810_v17 }
 0x254   :  { %v1993_v26 = vmul.f32 1.442695, %v1981_v23  ;;  %v2001_v28 = vsel %vm1952_vm4, %v6175_v24, 0.0 }
 0x255   :  { %v1995_v29 = vmul.f32 1.442695, %v1982_v25  ;;  %2002 = vadd.xlane.f32.xlu0 %v2001_v28  ;;  %v2055_v17 = vpack.c.bf16 %v1510_v22, %v1510_v22 }
 0x256   :  { %6182 = vpow2.f32 %v1993_v26 }
 0x257   :  { %v6177_v27 = vpop.eup %6176  ;;  %6184 = vpow2.f32 %v1995_v29  ;;  %v2292_v29 = vsel %vm2060_vm3, %v2054_v20, 0 }
 0x258   :  { %v2004_v4 = vsel %vm1952_vm4, %v6177_v27, 0.0 }
 0x259   :  { %2005 = vadd.xlane.f32.xlu1 %v2004_v4  ;;  %v1973_v30 = vpop.xlane.xlu0 %1972 }
 0x25a   :  { %v1976_v31 = vpop.xlane.xlu1 %1975  ;;  %v1983_v32 = vsub.f32 %v1900_v53, %v1973_v30 }
 0x25b   :  { %v6179_v33 = vpop.eup %6178  ;;  %v1984_v34 = vsub.f32 %v1946_v54, %v1976_v31  ;;  %v2051_v54 = vpack.c.bf16 %v1302_v49, %v1302_v49 }
 0x25c   :  { %v1997_v5 = vmul.f32 1.442695, %v1983_v32  ;;  %v2007_v35 = vsel %vm1952_vm4, %v6179_v33, 0.0  ;;  %v2338_v32 = vsel %vm2060_vm3, %v2055_v17, 0 }
 0x25d   :  { %v1999_v36 = vmul.f32 1.442695, %v1984_v34  ;;  %2008 = vadd.xlane.f32.xlu0 %v2007_v35  ;;  %v2154_v63 = vsel %vm2060_vm3, %v2051_v54, 0 }
 0x25e   :  { %6186 = vpow2.f32 %v1997_v5  ;;  %v133_v5 = vld [vmem:[%s7580_s8] sm:$0x3] }
 0x25f   :  { %v6825_v37 = vpop.eup %6180  ;;  %6188 = vpow2.f32 %v1999_v36 }
 0x260   :  { %v2010_v38 = vsel %vm1952_vm4, %v6825_v37, 0.0 }
 0x261   :  { %2011 = vadd.xlane.f32.xlu1 %v2010_v38 }
 0x263   :  { %v6829_v39 = vpop.eup %6182 }
 0x264   :  { %v6831_v40 = vpop.eup %6184  ;;  %v2013_v41 = vsel %vm1952_vm4, %v6829_v39, 0.0 }
 0x265   :  { %v2016_v42 = vsel %vm1952_vm4, %v6831_v40, 0.0  ;;  %2014 = vadd.xlane.f32.xlu0 %v2013_v41 }
 0x266   :  { %2017 = vadd.xlane.f32.xlu1 %v2016_v42  ;;  %v134_v42 = vld [vmem:[%s7580_s8 + $0x2] sm:$0x3] }
 0x26b   :  { %v6837_v43 = vpop.eup %6186 }
 0x26c   :  { %v6839_v44 = vpop.eup %6188  ;;  %v2019_v45 = vsel %vm1952_vm4, %v6837_v43, 0.0 }
 0x26d   :  { %v2022_v46 = vsel %vm1952_vm4, %v6839_v44, 0.0  ;;  %2020 = vadd.xlane.f32.xlu0 %v2019_v45 }
 0x26e   :  { %2023 = vadd.xlane.f32.xlu1 %v2022_v46 }
 0x2de   :  { %v2003_v12 = vpop.xlane.xlu0 %2002 }
 0x2df   :  { %6190 = vrcp.f32 %v2003_v12 }
 0x2e2   :  { %v2006_v13 = vpop.xlane.xlu1 %2005 }
 0x2e3   :  { %6192 = vrcp.f32 %v2006_v13 }
 0x2e6   :  { %v2009_v48 = vpop.xlane.xlu0 %2008 }
 0x2e7   :  { %6194 = vrcp.f32 %v2009_v48 }
 0x2ea   :  { %v2012_v51 = vpop.xlane.xlu1 %2011 }
 0x2eb   :  { %6196 = vrcp.f32 %v2012_v51  ;;  %v6940_v51 = vsel %vm2437_vm5, %v136_v47, 0  ;;  %v6250_v47 = vld [vmem:[%s7574_s2 + $0x68] sm:$0xff]  }
 0x2ec   :  { %v6191_v53 = vpop.eup %6190 }
 0x2ed   :  { %v2033_v55 = vmul.f32 %v6191_v53, %v6175_v24  ;;  %v5109_v24 = vld [vmem:[%s7579_s7 + $0x7] ss:$0 sm:$0xff] }
 0x2ee   :  { %v2015_v57 = vpop.xlane.xlu0 %2014 }
 0x2ef   :  { %v2018_v58 = vpop.xlane.xlu1 %2017  ;;  %6198 = vrcp.f32 %v2015_v57  ;;  %v2041_v62 = vpack.c.bf16 %v2033_v55, %v2033_v55 }
 0x2f0   :  { %v6193_v61 = vpop.eup %6192  ;;  %6200 = vrcp.f32 %v2018_v58  ;;  %v6951_v58 = vsel %vm2437_vm5, %v137_v52, 0  ;;  %v6256_v52 = vld [vmem:[%s7576_s4 + $0x18] sm:$0xff]  }
 0x2f1   :  { %5692 = vmatmul.mubr.msk.bf16.vlgmr.msra.gmra.mxu0 %vm1952_vm4, %v2041_v62  ;;  %v2034_v6 = vmul.f32 %v6193_v61, %v6177_v27  ;;  %v1562_v27 = vadd.f32 %v5109_v24, %v6812_v21 }
 0x2f2   :  { %5702 = vmatpush3.bf16.msra.mxu0 %v2154_v63  ;;  %5703 = vmatprep.mubr.msk.bf16.mxu0 %vm6333_vm0, %v6332_v1  ;;  %v138_v63 = vld [vmem:[%s7580_s8 + $0xa] sm:$0x3] }
 0x2f3   :  { %v2042_v7 = vpack.c.bf16 %v2034_v6, %v2034_v6  ;;  %5713 = vmatprep.subr.bf16.mxu0 %v6332_v1  ;;  %v6962_v3 = vsel %vm2437_vm5, %v138_v63, 0  ;;  %v6261_v63 = vld [vmem:[%s7576_s4 + $0x30] sm:$0xff]  }
 0x2f4   :  { %v6195_v59 = vpop.eup %6194 }
 0x2f5   :  { %5698 = vmatmul.mubr.msk.bf16.vlgmr.msra.gmra.mxu1 %vm1952_vm4, %v2042_v7  ;;  %v2035_v11 = vmul.f32 %v6195_v59, %v6179_v33  ;;  %v2056_v33 = vpack.c.bf16 %v1562_v27, %v1562_v27 }
 0x2f6   :  { %5708 = vmatpush3.bf16.msra.mxu1 %v2200_v9  ;;  %v2021_v15 = vpop.xlane.xlu0 %2020  ;;  %5709 = vmatprep.mubr.msk.bf16.mxu1 %vm6333_vm0, %v6332_v1  ;;  %v139_v9 = vld [vmem:[%s7580_s8 + $0xc] sm:$0x3] }
 0x2f7   :  { %v2024_v16 = vpop.xlane.xlu1 %2023  ;;  %6202 = vrcp.f32 %v2021_v15  ;;  %v2043_v18 = vpack.c.bf16 %v2035_v11, %v2035_v11  ;;  %5719 = vmatprep.subr.bf16.mxu1 %v6332_v1  ;;  %v2384_v36 = vsel %vm2060_vm3, %v2056_v33, 0  ;;  %v6973_v60 = vsel %vm2437_vm5, %v139_v9, 0  ;;  %v6267_v9 = vld [vmem:[%s7576_s4 + $0x60] sm:$0xff]  }
 0x2f8   :  { %v6197_v19 = vpop.eup %6196  ;;  %6204 = vrcp.f32 %v2024_v16 }
 0x2f9   :  { %5704 = vmatmul.mubr.msk.bf16.vlgmr.msra.gmra.mxu0 %vm1952_vm4, %v2043_v18  ;;  %v2036_v23 = vmul.f32 %v6197_v19, %v6825_v37  ;;  %v140_v18 = vld [vmem:[%s7580_s8 + $0xe] sm:$0x3] }
 0x2fa   :  { %5714 = vmatpush3.bf16.msra.mxu0 %v2246_v14  ;;  %5715 = vmatprep.mubr.msk.bf16.mxu0 %vm6333_vm0, %v6332_v1  ;;  %v6984_v22 = vsel %vm2437_vm5, %v140_v18, 0  ;;  %v6273_v18 = vld [vmem:[%s7578_s6 + $0x10] sm:$0xff]  }
 0x2fb   :  { %v2044_v25 = vpack.c.bf16 %v2036_v23, %v2036_v23  ;;  %5725 = vmatprep.subr.bf16.mxu0 %v6332_v1 }
 0x2fc   :  { %v6199_v26 = vpop.eup %6198 }
 0x2fd   :  { %v6201_v28 = vpop.eup %6200  ;;  %5710 = vmatmul.mubr.msk.bf16.vlgmr.msra.gmra.mxu1 %vm1952_vm4, %v2044_v25  ;;  %v2037_v4 = vmul.f32 %v6199_v26, %v6829_v39 }
 0x2fe   :  { %5720 = vmatpush3.bf16.msra.mxu1 %v2292_v29  ;;  %5721 = vmatprep.mubr.msk.bf16.mxu1 %vm6333_vm0, %v6332_v1  ;;  %v2038_v31 = vmul.f32 %v6201_v28, %v6831_v40  ;;  %v6907_v40 = vsel %vm2437_vm5, %v133_v5, 0  ;;  %v6240_v5 = vld [vmem:[%s7574_s2 + $0x18] sm:$0xff]  }
 0x2ff   :  { %v2045_v30 = vpack.c.bf16 %v2037_v4, %v2037_v4  ;;  %5731 = vmatprep.subr.bf16.mxu1 %v6332_v1 }
 0x300   :  { %v2046_v21 = vpack.c.bf16 %v2038_v31, %v2038_v31 }
 0x301   :  { %5716 = vmatmul.mubr.msk.bf16.vlgmr.msra.gmra.mxu0 %vm1952_vm4, %v2045_v30  ;;  %v6238_v30 = vld [vmem:[%s7574_s2 + $0x8] sm:$0xff]  }
 0x302   :  { %5726 = vmatpush3.bf16.msra.mxu0 %v2338_v32  ;;  %5727 = vmatprep.mubr.msk.bf16.mxu0 %vm6333_vm0, %v6332_v1 }
 0x303   :  { %5737 = vmatprep.subr.bf16.mxu0 %v6332_v1 }
 0x304   :  { %v6203_v34 = vpop.eup %6202 }
 0x305   :  { %v6205_v35 = vpop.eup %6204  ;;  %5722 = vmatmul.mubr.msk.bf16.vlgmr.msra.gmra.mxu1 %vm1952_vm4, %v2046_v21  ;;  %v2039_v37 = vmul.f32 %v6203_v34, %v6837_v43  ;;  %v6922_v43 = vsel %vm2437_vm5, %v134_v42, 0  ;;  %v6239_v34 = vld [vmem:[%s7574_s2] sm:$0xff]   ;;  %v6245_v42 = vld [vmem:[%s7574_s2 + $0x30] sm:$0xff]  }
 0x306   :  { %5732 = vmatpush3.bf16.msra.mxu1 %v2384_v36  ;;  %5733 = vmatprep.mubr.msk.bf16.mxu1 %vm6333_vm0, %v6332_v1  ;;  %v2040_v39 = vmul.f32 %v6205_v35, %v6839_v44  ;;  %v135_v44 = vld [vmem:[%s7580_s8 + $0x4] sm:$0x3] }
 0x307   :  { %v2047_v38 = vpack.c.bf16 %v2039_v37, %v2039_v37  ;;  %5743 = vmatprep.subr.bf16.mxu1 %v6332_v1  ;;  %v6930_v12 = vsel %vm2437_vm5, %v135_v44, 0  ;;  %v5159_v35 = vld [vmem:[%s7572_s0 + $0x4] sm:$0xf]  ;;  %v6241_v37 = vld [vmem:[%s7574_s2 + $0x10] sm:$0xff]   ;;  %v6246_v44 = vld [vmem:[%s7574_s2 + $0x48] sm:$0xff]  }
 0x308   :  { %v2048_v41 = vpack.c.bf16 %v2040_v39, %v2040_v39  ;;  %v6243_v39 = vld [vmem:[%s7574_s2 + $0x20] sm:$0xff]  }
 0x309   :  { %5728 = vmatmul.mubr.msk.bf16.vlgmr.msra.gmra.mxu0 %vm1952_vm4, %v2047_v38  ;;  %v6242_v38 = vld [vmem:[%s7574_s2 + $0x28] sm:$0xff]  }
 0x30a   :  { %5738 = vmatpush3.bf16.msra.mxu0 %v6907_v40  ;;  %5739 = vmatprep.mubr.msk.bf16.mxu0 %vm6333_vm0, %v6332_v1 }
 0x30b   :  { %5749 = vmatprep.subr.bf16.mxu0 %v6332_v1 }
 0x30d   :  { %5734 = vmatmul.mubr.msk.bf16.vlgmr.msra.gmra.mxu1 %vm1952_vm4, %v2048_v41  ;;  %v6244_v41 = vld [vmem:[%s7574_s2 + $0x38] sm:$0xff]  }
 0x30e   :  { %5745 = vmatprep.mubr.msk.bf16.mxu1 %vm6333_vm0, %v6332_v1  ;;  %5744 = vmatpush3.bf16.msra.mxu1 %v6922_v43 }
 0x30f   :  { %5755 = vmatprep.subr.bf16.mxu1 %v6332_v1 }
 0x3b1   :  { %v2098_v45 = vpop.f32.mrf.mxu0 }
 0x3b2   :  { %v2426_v46 = vpack.c.bf16 %v2098_v45, %v2098_v45  ;;  %v6247_v45 = vld [vmem:[%s7574_s2 + $0x40] sm:$0xff]  }
 0x3b3   :  { %v5693_v13 = vpop.f32.mrf.mxu0 }
 0x3b4   :  { %5740 = vmatmul.mubr.msk.bf16.vlgmr.msra.gmra.mxu0 %vm1583_vm2, %v2426_v46  ;;  %v6248_v46 = vld [vmem:[%s7574_s2 + $0x58] sm:$0xff]   ;;  %v6249_v13 = vld [vmem:[%s7574_s2 + $0x50] sm:$0xff]  }
 0x3b5   :  { %v2101_v48 = vpop.f32.mrf.mxu0  ;;  %v2144_v49 = vpop.f32.mrf.mxu1  ;;  %5750 = vmatpush3.bf16.msra.mxu0 %v6930_v12  ;;  %5751 = vmatprep.mubr.msk.bf16.mxu0 %vm6333_vm0, %v6332_v1 }
 0x3b6   :  { %v2427_v50 = vpack.c.bf16 %v2144_v49, %v2144_v49  ;;  %5761 = vmatprep.subr.bf16.mxu0 %v6332_v1  ;;  %v6251_v48 = vld [vmem:[%s7574_s2 + $0x60] sm:$0xff]   ;;  %v6252_v49 = vld [vmem:[%s7574_s2 + $0x78] sm:$0xff]  }
 0x3b7   :  { %v5694_v53 = vpop.f32.mrf.mxu0  ;;  %v5699_v54 = vpop.f32.mrf.mxu1 }
 0x3b8   :  { %5746 = vmatmul.mubr.msk.bf16.vlgmr.msra.gmra.mxu1 %vm1583_vm2, %v2427_v50  ;;  %v6253_v50 = vld [vmem:[%s7574_s2 + $0x70] sm:$0xff]   ;;  %v6254_v53 = vld [vmem:[%s7576_s4 + $0x8] sm:$0xff]   ;;  %v6255_v54 = vld [vmem:[%s7576_s4] sm:$0xff]  }
 0x3b9   :  { %v2147_v55 = vpop.f32.mrf.mxu1  ;;  %v2190_v56 = vpop.f32.mrf.mxu0  ;;  %5756 = vmatpush3.bf16.msra.mxu1 %v6940_v51  ;;  %5757 = vmatprep.mubr.msk.bf16.mxu1 %vm6333_vm0, %v6332_v1 }
 0x3ba   :  { %v2428_v57 = vpack.c.bf16 %v2190_v56, %v2190_v56  ;;  %5767 = vmatprep.subr.bf16.mxu1 %v6332_v1  ;;  %v7100_v55 = vld [vmem:[%s7573_s1 + $0x4] sm:$0xf]  ;;  %v6257_v56 = vld [vmem:[%s7576_s4 + $0x10] sm:$0xff]  }
 0x3bb   :  { %v5700_v62 = vpop.f32.mrf.mxu1  ;;  %v5705_v61 = vpop.f32.mrf.mxu0 }
 0x3bc   :  { %5752 = vmatmul.mubr.msk.bf16.vlgmr.msra.gmra.mxu0 %vm1583_vm2, %v2428_v57  ;;  %v6258_v57 = vld [vmem:[%s7576_s4 + $0x28] sm:$0xff]   ;;  %v6259_v62 = vld [vmem:[%s7576_s4 + $0x20] sm:$0xff]   ;;  %v6260_v61 = vld [vmem:[%s7576_s4 + $0x38] sm:$0xff]  }
 0x3bd   :  { %v2193_v0 = vpop.f32.mrf.mxu0  ;;  %v2236_v2 = vpop.f32.mrf.mxu1  ;;  %5762 = vmatpush3.bf16.msra.mxu0 %v6951_v58  ;;  %5763 = vmatprep.mubr.msk.bf16.mxu0 %vm6333_vm0, %v6332_v1 }
 0x3be   :  { %v2429_v6 = vpack.c.bf16 %v2236_v2, %v2236_v2  ;;  %5773 = vmatprep.subr.bf16.mxu0 %v6332_v1  ;;  %v6262_v0 = vld [vmem:[%s7576_s4 + $0x48] sm:$0xff]   ;;  %v6263_v2 = vld [vmem:[%s7576_s4 + $0x40] sm:$0xff]  }
 0x3bf   :  { %v5706_v7 = vpop.f32.mrf.mxu0  ;;  %v5711_v59 = vpop.f32.mrf.mxu1 }
 0x3c0   :  { %5758 = vmatmul.mubr.msk.bf16.vlgmr.msra.gmra.mxu1 %vm1583_vm2, %v2429_v6  ;;  %v6264_v6 = vld [vmem:[%s7576_s4 + $0x58] sm:$0xff]   ;;  %v6265_v7 = vld [vmem:[%s7576_s4 + $0x50] sm:$0xff]   ;;  %v6266_v59 = vld [vmem:[%s7576_s4 + $0x68] sm:$0xff]  }
 0x3c1   :  { %v2239_v10 = vpop.f32.mrf.mxu1  ;;  %v2282_v8 = vpop.f32.mrf.mxu0  ;;  %5768 = vmatpush3.bf16.msra.mxu1 %v6962_v3  ;;  %5769 = vmatprep.mubr.msk.bf16.mxu1 %vm6333_vm0, %v6332_v1 }
 0x3c2   :  { %v2430_v11 = vpack.c.bf16 %v2282_v8, %v2282_v8  ;;  %5779 = vmatprep.subr.bf16.mxu1 %v6332_v1  ;;  %v6268_v10 = vld [vmem:[%s7576_s4 + $0x78] sm:$0xff]   ;;  %v6269_v8 = vld [vmem:[%s7576_s4 + $0x70] sm:$0xff]  }
 0x3c3   :  { %v5712_v15 = vpop.f32.mrf.mxu1  ;;  %v5717_v16 = vpop.f32.mrf.mxu0 }
 0x3c4   :  { %5764 = vmatmul.mubr.msk.bf16.vlgmr.msra.gmra.mxu0 %vm1583_vm2, %v2430_v11  ;;  %v6270_v11 = vld [vmem:[%s7578_s6 + $0x8] sm:$0xff]   ;;  %v6271_v15 = vld [vmem:[%s7578_s6 + $0x18] sm:$0xff]   ;;  %v6272_v16 = vld [vmem:[%s7578_s6] sm:$0xff]  }
 0x3c5   :  { %v2285_v19 = vpop.f32.mrf.mxu0  ;;  %v2328_v14 = vpop.f32.mrf.mxu1  ;;  %5774 = vmatpush3.bf16.msra.mxu0 %v6973_v60  ;;  %5775 = vmatprep.mubr.msk.bf16.mxu0 %vm6333_vm0, %v6332_v1 }
 0x3c6   :  { %v2431_v20 = vpack.c.bf16 %v2328_v14, %v2328_v14  ;;  %5785 = vmatprep.subr.bf16.mxu0 %v6332_v1  ;;  %v6274_v19 = vld [vmem:[%s7578_s6 + $0x28] sm:$0xff]   ;;  %v6275_v14 = vld [vmem:[%s7578_s6 + $0x38] sm:$0xff]  }
 0x3c7   :  { %v5718_v23 = vpop.f32.mrf.mxu0  ;;  %v5723_v24 = vpop.f32.mrf.mxu1 }
 0x3c8   :  { %5770 = vmatmul.mubr.msk.bf16.vlgmr.msra.gmra.mxu1 %vm1583_vm2, %v2431_v20  ;;  %v6276_v20 = vld [vmem:[%s7578_s6 + $0x20] sm:$0xff]   ;;  %v6277_v23 = vld [vmem:[%s7578_s6 + $0x30] sm:$0xff]   ;;  %v6278_v24 = vld [vmem:[%s7578_s6 + $0x48] sm:$0xff]  }
 0x3c9   :  { %v2331_v25 = vpop.f32.mrf.mxu1  ;;  %v2374_v26 = vpop.f32.mrf.mxu0  ;;  %5780 = vmatpush3.bf16.msra.mxu1 %v6984_v22  ;;  %5781 = vmatprep.mubr.msk.bf16.mxu1 %vm6333_vm0, %v6332_v1 }
 0x3ca   :  { %v2432_v28 = vpack.c.bf16 %v2374_v26, %v2374_v26  ;;  %5793 = vmatprep.subr.bf16.mxu1 %v6332_v1  ;;  %v6279_v25 = vld [vmem:[%s7578_s6 + $0x58] sm:$0xff]   ;;  %v6280_v26 = vld [vmem:[%s7578_s6 + $0x40] sm:$0xff]  }
 0x3cb   :  { %v5724_v29 = vpop.f32.mrf.mxu1  ;;  %v5729_v17 = vpop.f32.mrf.mxu0 }
 0x3cc   :  { %5776 = vmatmul.mubr.msk.bf16.vlgmr.msra.gmra.mxu0 %vm1583_vm2, %v2432_v28  ;;  %v6281_v28 = vld [vmem:[%s7578_s6 + $0x50] sm:$0xff]   ;;  %v6282_v29 = vld [vmem:[%s7578_s6 + $0x68] sm:$0xff]   ;;  %v6283_v17 = vld [vmem:[%s7578_s6 + $0x78] sm:$0xff]  }
 0x3cd   :  { %v2377_v27 = vpop.f32.mrf.mxu0  ;;  %v2420_v4 = vpop.f32.mrf.mxu1  ;;  %5786 = vmatpush3.bf16.msra.mxu0 %v6238_v30  ;;  %5789 = vmatprep.mubr.msk.bf16.mxu0 %vm6333_vm0, %v6332_v1 }
 0x3ce   :  { %v2433_v31 = vpack.c.bf16 %v2420_v4, %v2420_v4  ;;  %5787 = vmatprep.subr.bf16.mxu0 %v6332_v1  ;;  %v6284_v27 = vld [vmem:[%s7578_s6 + $0x60] sm:$0xff]   ;;  %v6285_v4 = vld [vmem:[%s7578_s6 + $0x70] sm:$0xff]  }
 0x3cf   :  { %v5730_v32 = vpop.f32.mrf.mxu0  ;;  %v5735_v33 = vpop.f32.mrf.mxu1 }
 0x3d0   :  { %5782 = vmatmul.mubr.msk.bf16.vlgmr.msra.gmra.mxu1 %vm1583_vm2, %v2433_v31 }
 0x3d1   :  { %v2423_v21 = vpop.f32.mrf.mxu1  ;;  %5788 = vmatpush3.bf16.msra.mxu0 %v6239_v34  ;;  %5794 = vmatpush3.bf16.msra.mxu1 %v6240_v5 }
 0x3d2   :  { %5795 = vmatprep.subr.bf16.mxu1 %v6332_v1  ;;  %5801 = vmatprep.subr.bf16.mxu0 %v6332_v1 }
 0x3d3   :  { %v5736_v36 = vpop.f32.mrf.mxu1  ;;  %5797 = vmatprep.mubr.msk.bf16.mxu1 %vm6333_vm0, %v6332_v1 }
 0x3d4   :  { %5790 = vmatmul.mubr.msk.bf16.vlgmr.msra.gmra.mxu0 %vm228_vm1, %v5159_v35 }
 0x3d5   :  { %5796 = vmatpush3.bf16.msra.mxu1 %v6241_v37  ;;  %5802 = vmatpush3.bf16.msra.mxu0 %v6242_v38 }
 0x3d6   :  { %5803 = vmatprep.subr.bf16.mxu0 %v6332_v1  ;;  %5809 = vmatprep.subr.bf16.mxu1 %v6332_v1 }
 0x3d7   :  { %5805 = vmatprep.mubr.msk.bf16.mxu0 %vm6333_vm0, %v6332_v1 }
 0x3d8   :  { %5798 = vmatmul.mubr.msk.bf16.vlgmr.msra.gmra.mxu1 %vm228_vm1, %v5159_v35 }
 0x3d9   :  { %5804 = vmatpush3.bf16.msra.mxu0 %v6243_v39  ;;  %5810 = vmatpush3.bf16.msra.mxu1 %v6244_v41 }
 0x3da   :  { %5811 = vmatprep.subr.bf16.mxu1 %v6332_v1  ;;  %5817 = vmatprep.subr.bf16.mxu0 %v6332_v1 }
 0x3db   :  { %5813 = vmatprep.mubr.msk.bf16.mxu1 %vm6333_vm0, %v6332_v1 }
 0x3dc   :  { %5806 = vmatmul.mubr.msk.bf16.vlgmr.msra.gmra.mxu0 %vm228_vm1, %v5159_v35 }
 0x3dd   :  { %5812 = vmatpush3.bf16.msra.mxu1 %v6245_v42  ;;  %5818 = vmatpush3.bf16.msra.mxu0 %v6246_v44 }
 0x3de   :  { %5819 = vmatprep.subr.bf16.mxu0 %v6332_v1  ;;  %5825 = vmatprep.subr.bf16.mxu1 %v6332_v1 }
 0x3df   :  { %5821 = vmatprep.mubr.msk.bf16.mxu0 %vm6333_vm0, %v6332_v1 }
 0x3e0   :  { %5814 = vmatmul.mubr.msk.bf16.vlgmr.msra.gmra.mxu1 %vm228_vm1, %v5159_v35 }
 0x3e1   :  { %5820 = vmatpush3.bf16.msra.mxu0 %v6247_v45  ;;  %5826 = vmatpush3.bf16.msra.mxu1 %v6248_v46 }
 0x3e2   :  { %5827 = vmatprep.subr.bf16.mxu1 %v6332_v1  ;;  %5833 = vmatprep.subr.bf16.mxu0 %v6332_v1 }
 0x3e3   :  { %5829 = vmatprep.mubr.msk.bf16.mxu1 %vm6333_vm0, %v6332_v1 }
 0x3e4   :  { %5822 = vmatmul.mubr.msk.bf16.vlgmr.msra.gmra.mxu0 %vm228_vm1, %v5159_v35 }
 0x3e5   :  { %5828 = vmatpush3.bf16.msra.mxu1 %v6249_v13  ;;  %5834 = vmatpush3.bf16.msra.mxu0 %v6250_v47 }
 0x3e6   :  { %5835 = vmatprep.subr.bf16.mxu0 %v6332_v1  ;;  %5841 = vmatprep.subr.bf16.mxu1 %v6332_v1 }
 0x3e7   :  { %5837 = vmatprep.mubr.msk.bf16.mxu0 %vm6333_vm0, %v6332_v1 }
 0x3e8   :  { %5830 = vmatmul.mubr.msk.bf16.vlgmr.msra.gmra.mxu1 %vm228_vm1, %v5159_v35 }
 0x3e9   :  { %5836 = vmatpush3.bf16.msra.mxu0 %v6251_v48  ;;  %5842 = vmatpush3.bf16.msra.mxu1 %v6252_v49 }
 0x3ea   :  { %5843 = vmatprep.subr.bf16.mxu1 %v6332_v1  ;;  %5849 = vmatprep.subr.bf16.mxu0 %v6332_v1 }
 0x3eb   :  { %5845 = vmatprep.mubr.msk.bf16.mxu1 %vm6333_vm0, %v6332_v1 }
 0x3ec   :  { %5838 = vmatmul.mubr.msk.bf16.vlgmr.msra.gmra.mxu0 %vm228_vm1, %v5159_v35 }
 0x3ed   :  { %5844 = vmatpush3.bf16.msra.mxu1 %v6253_v50  ;;  %5850 = vmatpush3.bf16.msra.mxu0 %v6254_v53 }
 0x3ee   :  { %5851 = vmatprep.subr.bf16.mxu0 %v6332_v1  ;;  %5857 = vmatprep.subr.bf16.mxu1 %v6332_v1 }
 0x3ef   :  { %5853 = vmatprep.mubr.msk.bf16.mxu0 %vm6333_vm0, %v6332_v1 }
 0x3f0   :  { %5846 = vmatmul.mubr.msk.bf16.vlgmr.msra.gmra.mxu1 %vm228_vm1, %v5159_v35 }
 0x3f1   :  { %5852 = vmatpush3.bf16.msra.mxu0 %v6255_v54  ;;  %5858 = vmatpush3.bf16.msra.mxu1 %v6256_v52 }
 0x3f2   :  { %5859 = vmatprep.subr.bf16.mxu1 %v6332_v1  ;;  %5865 = vmatprep.subr.bf16.mxu0 %v6332_v1 }
 0x3f3   :  { %5861 = vmatprep.mubr.msk.bf16.mxu1 %vm6333_vm0, %v6332_v1 }
 0x3f4   :  { %5854 = vmatmul.mubr.msk.bf16.vlgmr.msra.gmra.mxu0 %vm228_vm1, %v7100_v55 }
 0x3f5   :  { %5860 = vmatpush3.bf16.msra.mxu1 %v6257_v56  ;;  %5866 = vmatpush3.bf16.msra.mxu0 %v6258_v57 }
 0x3f6   :  { %5867 = vmatprep.subr.bf16.mxu0 %v6332_v1  ;;  %5873 = vmatprep.subr.bf16.mxu1 %v6332_v1 }
 0x3f7   :  { %5869 = vmatprep.mubr.msk.bf16.mxu0 %vm6333_vm0, %v6332_v1 }
 0x3f8   :  { %5862 = vmatmul.mubr.msk.bf16.vlgmr.msra.gmra.mxu1 %vm228_vm1, %v7100_v55 }
 0x3f9   :  { %5868 = vmatpush3.bf16.msra.mxu0 %v6259_v62  ;;  %5874 = vmatpush3.bf16.msra.mxu1 %v6260_v61 }
 0x3fa   :  { %5875 = vmatprep.subr.bf16.mxu1 %v6332_v1  ;;  %5881 = vmatprep.subr.bf16.mxu0 %v6332_v1 }
 0x3fb   :  { %5877 = vmatprep.mubr.msk.bf16.mxu1 %vm6333_vm0, %v6332_v1 }
 0x3fc   :  { %5870 = vmatmul.mubr.msk.bf16.vlgmr.msra.gmra.mxu0 %vm228_vm1, %v7100_v55 }
 0x3fd   :  { %5876 = vmatpush3.bf16.msra.mxu1 %v6261_v63  ;;  %5882 = vmatpush3.bf16.msra.mxu0 %v6262_v0 }
 0x3fe   :  { %5883 = vmatprep.subr.bf16.mxu0 %v6332_v1  ;;  %5889 = vmatprep.subr.bf16.mxu1 %v6332_v1 }
 0x3ff   :  { %5885 = vmatprep.mubr.msk.bf16.mxu0 %vm6333_vm0, %v6332_v1 }
 0x400   :  { %5878 = vmatmul.mubr.msk.bf16.vlgmr.msra.gmra.mxu1 %vm228_vm1, %v7100_v55 }
 0x401   :  { %5884 = vmatpush3.bf16.msra.mxu0 %v6263_v2  ;;  %5890 = vmatpush3.bf16.msra.mxu1 %v6264_v6 }
 0x402   :  { %5891 = vmatprep.subr.bf16.mxu1 %v6332_v1  ;;  %5897 = vmatprep.subr.bf16.mxu0 %v6332_v1 }
 0x403   :  { %5893 = vmatprep.mubr.msk.bf16.mxu1 %vm6333_vm0, %v6332_v1 }
 0x404   :  { %5886 = vmatmul.mubr.msk.bf16.vlgmr.msra.gmra.mxu0 %vm228_vm1, %v7100_v55 }
 0x405   :  { %5892 = vmatpush3.bf16.msra.mxu1 %v6265_v7  ;;  %5898 = vmatpush3.bf16.msra.mxu0 %v6266_v59 }
 0x406   :  { %5899 = vmatprep.subr.bf16.mxu0 %v6332_v1  ;;  %5905 = vmatprep.subr.bf16.mxu1 %v6332_v1 }
 0x407   :  { %5901 = vmatprep.mubr.msk.bf16.mxu0 %vm6333_vm0, %v6332_v1 }
 0x408   :  { %5894 = vmatmul.mubr.msk.bf16.vlgmr.msra.gmra.mxu1 %vm228_vm1, %v7100_v55 }
 0x409   :  { %5900 = vmatpush3.bf16.msra.mxu0 %v6267_v9  ;;  %5906 = vmatpush3.bf16.msra.mxu1 %v6268_v10 }
 0x40a   :  { %5907 = vmatprep.subr.bf16.mxu1 %v6332_v1  ;;  %5909 = vmatprep.mubr.msk.bf16.mxu1 %vm6333_vm0, %v6332_v1 }
 0x40b   :  { %5913 = vmatprep.subr.bf16.mxu0 %v6332_v1 }
 0x40c   :  { %5902 = vmatmul.mubr.msk.bf16.vlgmr.msra.gmra.mxu0 %vm228_vm1, %v7100_v55 }
 0x40d   :  { %5908 = vmatpush3.bf16.msra.mxu1 %v6269_v8  ;;  %5914 = vmatpush3.bf16.msra.mxu0 %v6270_v11 }
 0x40e   :  { %5921 = vmatprep.subr.bf16.mxu1 %v6332_v1  ;;  %5915 = vmatprep.subr.bf16.mxu0 %v6332_v1 }
 0x40f   :  { %5917 = vmatprep.mubr.msk.bf16.mxu0 %vm6333_vm0, %v6332_v1 }
 0x410   :  { %5910 = vmatmul.mubr.msk.bf16.vlgmr.msra.gmra.mxu1 %vm228_vm1, %v7100_v55 }
 0x411   :  { %5922 = vmatpush3.bf16.msra.mxu1 %v6271_v15  ;;  %5916 = vmatpush3.bf16.msra.mxu0 %v6272_v16  ;;  %v7296_v16 = vld [vmem:[%s7581_s9] ss:$0 sm:$0xff] }
 0x412   :  { %5923 = vmatprep.subr.bf16.mxu1 %v6332_v1  ;;  %5929 = vmatprep.subr.bf16.mxu0 %v6332_v1 }
 0x413   :  { %5925 = vmatprep.mubr.msk.bf16.mxu1 %vm6333_vm0, %v6332_v1 }
 0x414   :  { %5918 = vmatmul.mubr.msk.bf16.vlgmr.msra.gmra.mxu0 %vm228_vm1, %v7100_v55 }
 0x415   :  { %5924 = vmatpush3.bf16.msra.mxu1 %v6273_v18  ;;  %5930 = vmatpush3.bf16.msra.mxu0 %v6274_v19 }
 0x416   :  { %5937 = vmatprep.subr.bf16.mxu1 %v6332_v1  ;;  %5931 = vmatprep.subr.bf16.mxu0 %v6332_v1 }
 0x417   :  { %5933 = vmatprep.mubr.msk.bf16.mxu0 %vm6333_vm0, %v6332_v1 }
 0x418   :  { %5926 = vmatmul.mubr.msk.bf16.vlgmr.msra.gmra.mxu1 %vm228_vm1, %v7100_v55 }
 0x419   :  { %5938 = vmatpush3.bf16.msra.mxu1 %v6275_v14  ;;  %5932 = vmatpush3.bf16.msra.mxu0 %v6276_v20 }
 0x41a   :  { %5939 = vmatprep.subr.bf16.mxu1 %v6332_v1  ;;  %5945 = vmatprep.subr.bf16.mxu0 %v6332_v1 }
 0x41b   :  { %5941 = vmatprep.mubr.msk.bf16.mxu1 %vm6333_vm0, %v6332_v1 }
 0x41c   :  { %5934 = vmatmul.mubr.msk.bf16.vlgmr.msra.gmra.mxu0 %vm228_vm1, %v7100_v55 }
 0x41d   :  { %5940 = vmatpush3.bf16.msra.mxu1 %v6277_v23  ;;  %5946 = vmatpush3.bf16.msra.mxu0 %v6278_v24 }
 0x41e   :  { %5953 = vmatprep.subr.bf16.mxu1 %v6332_v1  ;;  %5947 = vmatprep.subr.bf16.mxu0 %v6332_v1 }
 0x41f   :  { %5949 = vmatprep.mubr.msk.bf16.mxu0 %vm6333_vm0, %v6332_v1 }
 0x420   :  { %5942 = vmatmul.mubr.msk.bf16.vlgmr.msra.gmra.mxu1 %vm228_vm1, %v7100_v55 }
 0x421   :  { %5954 = vmatpush3.bf16.msra.mxu1 %v6279_v25  ;;  %5948 = vmatpush3.bf16.msra.mxu0 %v6280_v26 }
 0x422   :  { %5955 = vmatprep.subr.bf16.mxu1 %v6332_v1  ;;  %5961 = vmatprep.subr.bf16.mxu0 %v6332_v1 }
 0x423   :  { %5957 = vmatprep.mubr.msk.bf16.mxu1 %vm6333_vm0, %v6332_v1 }
 0x424   :  { %5950 = vmatmul.mubr.msk.bf16.vlgmr.msra.gmra.mxu0 %vm228_vm1, %v7100_v55 }
 0x425   :  { %5956 = vmatpush3.bf16.msra.mxu1 %v6281_v28  ;;  %5962 = vmatpush3.bf16.msra.mxu0 %v6282_v29 }
 0x426   :  { %5969 = vmatprep.subr.bf16.mxu1 %v6332_v1  ;;  %5963 = vmatprep.subr.bf16.mxu0 %v6332_v1 }
 0x427   :  { %5965 = vmatprep.mubr.msk.bf16.mxu0 %vm6333_vm0, %v6332_v1 }
 0x428   :  { %5958 = vmatmul.mubr.msk.bf16.vlgmr.msra.gmra.mxu1 %vm228_vm1, %v7100_v55 }
 0x429   :  { %5970 = vmatpush3.bf16.msra.mxu1 %v6283_v17  ;;  %5964 = vmatpush3.bf16.msra.mxu0 %v6284_v27 }
 0x42a   :  { %5971 = vmatprep.subr.bf16.mxu1 %v6332_v1  ;;  %5973 = vmatprep.mubr.msk.bf16.mxu1 %vm6333_vm0, %v6332_v1 }
 0x42b   :  { %5977 = vmatprep.subr.bf16.mxu0 %v6332_v1 }
 0x42c   :  { %5966 = vmatmul.mubr.msk.bf16.vlgmr.msra.gmra.mxu0 %vm228_vm1, %v7100_v55 }
 0x42d   :  { %5972 = vmatpush3.bf16.msra.mxu1 %v6285_v4  ;;  %5979 = vmatprep.mubr.msk.bf16.mxu0 %vm6333_vm0, %v6332_v1 }
 0x42e   :  { %5983 = vmatprep.subr.bf16.mxu1 %v6332_v1 }
 0x430   :  { %5974 = vmatmul.mubr.msk.bf16.vlgmr.msra.gmra.mxu1 %vm228_vm1, %v7100_v55 }
 0x431   :  { %5985 = vmatprep.mubr.msk.bf16.mxu1 %vm6333_vm0, %v6332_v1 }
 0x474   :  { %v2475_v30 = vpop.f32.mrf.mxu0 }
 0x475   :  { %v2803_v13 = vsel %vm228_vm1, %v2475_v30, 0.0 }
 0x476   :  { %v5741_v31 = vpop.f32.mrf.mxu0 }
 0x478   :  { %v2478_v32 = vpop.f32.mrf.mxu0  ;;  %v2521_v33 = vpop.f32.mrf.mxu1 }
 0x479   :  { %v2804_v44 = vsel %vm228_vm1, %v2521_v33, 0.0 }
 0x47a   :  { %v5742_v21 = vpop.f32.mrf.mxu0  ;;  %v5747_v34 = vpop.f32.mrf.mxu1  ;;  %v2805_v48 = vadd.f32 %v2804_v44, %v2803_v13 }
 0x47c   :  { %v2524_v5 = vpop.f32.mrf.mxu1  ;;  %v2567_v35 = vpop.f32.mrf.mxu0 }
 0x47d   :  { %v2806_v47 = vsel %vm228_vm1, %v2567_v35, 0.0 }
 0x47e   :  { %v5748_v36 = vpop.f32.mrf.mxu1  ;;  %v5753_v37 = vpop.f32.mrf.mxu0  ;;  %v2807_v54 = vadd.f32 %v2806_v47, %v2805_v48 }
 0x480   :  { %v2570_v38 = vpop.f32.mrf.mxu0  ;;  %v2613_v39 = vpop.f32.mrf.mxu1 }
 0x481   :  { %v2808_v53 = vsel %vm228_vm1, %v2613_v39, 0.0 }
 0x482   :  { %v5754_v41 = vpop.f32.mrf.mxu0  ;;  %v5759_v42 = vpop.f32.mrf.mxu1  ;;  %v2809_v57 = vadd.f32 %v2808_v53, %v2807_v54 }
 0x484   :  { %v2616_v45 = vpop.f32.mrf.mxu1  ;;  %v2659_v46 = vpop.f32.mrf.mxu0 }
 0x485   :  { %v2810_v56 = vsel %vm228_vm1, %v2659_v46, 0.0 }
 0x486   :  { %v5760_v49 = vpop.f32.mrf.mxu1  ;;  %v5765_v50 = vpop.f32.mrf.mxu0  ;;  %v2811_v0 = vadd.f32 %v2810_v56, %v2809_v57  ;;  %v6286_v56 = vld [vmem:[%s7577_s5] ss:$0 sm:$0xff] }
 0x488   :  { %v2662_v52 = vpop.f32.mrf.mxu0  ;;  %v2705_v55 = vpop.f32.mrf.mxu1 }
 0x489   :  { %v2812_v63 = vsel %vm228_vm1, %v2705_v55, 0.0 }
 0x48a   :  { %v5766_v62 = vpop.f32.mrf.mxu0  ;;  %v5771_v61 = vpop.f32.mrf.mxu1  ;;  %v2813_v59 = vadd.f32 %v2812_v63, %v2811_v0 }
 0x48c   :  { %v2708_v2 = vpop.f32.mrf.mxu1  ;;  %v2751_v6 = vpop.f32.mrf.mxu0 }
 0x48d   :  { %v2814_v7 = vsel %vm228_vm1, %v2751_v6, 0.0 }
 0x48e   :  { %v5772_v9 = vpop.f32.mrf.mxu1  ;;  %v5777_v10 = vpop.f32.mrf.mxu0  ;;  %v2815_v8 = vadd.f32 %v2814_v7, %v2813_v59  ;;  %v6287_v7 = vld [vmem:[%s7577_s5 + $0x1] ss:$0 sm:$0xff] }
 0x490   :  { %v2754_v11 = vpop.f32.mrf.mxu0  ;;  %v2797_v15 = vpop.f32.mrf.mxu1 }
 0x491   :  { %v2816_v18 = vsel %vm228_vm1, %v2797_v15, 0.0 }
 0x492   :  { %v2817_v19 = vadd.f32 %v2816_v18, %v2815_v8  ;;  %v5778_v14 = vpop.f32.mrf.mxu0  ;;  %v5783_v20 = vpop.f32.mrf.mxu1  ;;  %v6288_v8 = vld [vmem:[%s7575_s3] ss:$0 sm:$0xff] }
 0x493   :  { %v6289_v20 = vld [vmem:[%s7577_s5 + $0x2] ss:$0 sm:$0xff] }
 0x494   :  { %v2824_v23 = vadd.f32 %v7296_v16, %v2817_v19  ;;  %v2800_v24 = vpop.f32.mrf.mxu1  ;;  %v2867_v25 = vpop.f32.mrf.mxu0 }
 0x495   :  { %v2868_v11 = vadd.f32 %v6288_v8, %v2867_v25  ;;  %v6290_v25 = vld [vmem:[%s7575_s3 + $0x1] ss:$0 sm:$0xff]  ;;  %v6297_v8 = vld [vmem:[%s7577_s5 + $0x6] ss:$0 sm:$0xff] }
 0x496   :  { %2825 = vst.msk [vmem:[#allocation2] sm:$0xff] %vm228_vm1, %v2824_v23  ;;  %v5784_v26 = vpop.f32.mrf.mxu1  ;;  %v5791_v28 = vpop.f32.mrf.mxu0 }
 0x497   :  { %v3796_v28 = vpack.c.bf16 %v2868_v11, %v2868_v11 }
 0x498   :  { %v2870_v29 = vpop.f32.mrf.mxu0  ;;  %v2907_v17 = vpop.f32.mrf.mxu1 }
 0x499   :  { %v2908_v29 = vadd.f32 %v6290_v25, %v2907_v17 }
 0x49a   :  { %v5792_v27 = vpop.f32.mrf.mxu0  ;;  %v5799_v4 = vpop.f32.mrf.mxu1 }
 0x49b   :  { %v3797_v17 = vpack.c.bf16 %v2908_v29, %v2908_v29 }
 0x49c   :  { %v2910_v30 = vpop.f32.mrf.mxu1  ;;  %v7301_v31 = vpop.f32.mrf.mxu0 }
 0x49e   :  { %v5800_v32 = vpop.f32.mrf.mxu1  ;;  %v5807_v33 = vpop.f32.mrf.mxu0 }
 0x49f   :  { %v6291_v33 = vld [vmem:[%s7577_s5 + $0x3] ss:$0 sm:$0xff] }
 0x4a0   :  { %v2950_v21 = vpop.f32.mrf.mxu0  ;;  %v7303_v34 = vpop.f32.mrf.mxu1 }
 0x4a2   :  { %v5808_v5 = vpop.f32.mrf.mxu0  ;;  %v5815_v35 = vpop.f32.mrf.mxu1 }
 0x4a4   :  { %v2990_v36 = vpop.f32.mrf.mxu1  ;;  %v7305_v37 = vpop.f32.mrf.mxu0 }
 0x4a5   :  { %v6292_v36 = vld [vmem:[%s7575_s3 + $0x2] ss:$0 sm:$0xff] }
 0x4a6   :  { %v5816_v38 = vpop.f32.mrf.mxu1  ;;  %v5823_v39 = vpop.f32.mrf.mxu0 }
 0x4a7   :  { %v2948_v38 = vadd.f32 %v6292_v36, %v7301_v31 }
 0x4a8   :  { %v3030_v41 = vpop.f32.mrf.mxu0  ;;  %v7307_v42 = vpop.f32.mrf.mxu1 }
 0x4a9   :  { %v3798_v31 = vpack.c.bf16 %v2948_v38, %v2948_v38 }
 0x4aa   :  { %v5824_v44 = vpop.f32.mrf.mxu0  ;;  %v5831_v45 = vpop.f32.mrf.mxu1 }
 0x4ac   :  { %v3070_v46 = vpop.f32.mrf.mxu1  ;;  %v7309_v13 = vpop.f32.mrf.mxu0 }
 0x4ad   :  { %v6293_v46 = vld [vmem:[%s7577_s5 + $0x4] ss:$0 sm:$0xff] }
 0x4ae   :  { %v5832_v47 = vpop.f32.mrf.mxu1  ;;  %v5839_v48 = vpop.f32.mrf.mxu0 }
 0x4b0   :  { %v3110_v49 = vpop.f32.mrf.mxu0  ;;  %v7311_v50 = vpop.f32.mrf.mxu1 }
 0x4b2   :  { %v5840_v53 = vpop.f32.mrf.mxu0  ;;  %v5847_v54 = vpop.f32.mrf.mxu1 }
 0x4b3   :  { %v6294_v53 = vld [vmem:[%s7575_s3 + $0x3] ss:$0 sm:$0xff] }
 0x4b4   :  { %v3150_v52 = vpop.f32.mrf.mxu1  ;;  %v3190_v55 = vpop.f32.mrf.mxu0  ;;  %v2988_v54 = vadd.f32 %v6294_v53, %v7303_v34 }
 0x4b5   :  { %v3191_v57 = vadd.f32 %v6286_v56, %v3190_v55 }
 0x4b6   :  { %v5848_v62 = vpop.f32.mrf.mxu1  ;;  %v5855_v61 = vpop.f32.mrf.mxu0  ;;  %v3799_v34 = vpack.c.bf16 %v2988_v54, %v2988_v54 }
 0x4b7   :  { %v3804_v63 = vpack.c.bf16 %v3191_v57, %v3191_v57  ;;  %v6295_v62 = vld [vmem:[%s7577_s5 + $0x5] ss:$0 sm:$0xff] }
 0x4b8   :  { %v3193_v0 = vpop.f32.mrf.mxu0  ;;  %v3230_v2 = vpop.f32.mrf.mxu1 }
 0x4b9   :  { %v3816_v6 = vsel %vm1583_vm2, %v3804_v63, 0  ;;  %v3231_v59 = vadd.f32 %v6287_v7, %v3230_v2  ;;  %v6296_v2 = vld [vmem:[%s7575_s3 + $0x4] ss:$0 sm:$0xff] }
 0x4ba   :  { %v5856_v9 = vpop.f32.mrf.mxu0  ;;  %v5863_v10 = vpop.f32.mrf.mxu1  ;;  %5978 = vmatpush3.bf16.xpose.msra.mxu0 %v3816_v6  ;;  %v3028_v6 = vadd.f32 %v6296_v2, %v7305_v37 }
 0x4bb   :  { %v3805_v15 = vpack.c.bf16 %v3231_v59, %v3231_v59  ;;  %5989 = vmatprep.subr.bf16.mxu0 %v6332_v1 }
 0x4bc   :  { %v3233_v18 = vpop.f32.mrf.mxu1  ;;  %v3270_v19 = vpop.f32.mrf.mxu0  ;;  %v3800_v37 = vpack.c.bf16 %v3028_v6, %v3028_v6 }
 0x4bd   :  { %v3862_v14 = vsel %vm1583_vm2, %v3805_v15, 0  ;;  %v3271_v23 = vadd.f32 %v6289_v20, %v3270_v19  ;;  %v6298_v19 = vld [vmem:[%s7575_s3 + $0x5] ss:$0 sm:$0xff] }
 0x4be   :  { %v5864_v24 = vpop.f32.mrf.mxu1  ;;  %v5871_v26 = vpop.f32.mrf.mxu0  ;;  %5984 = vmatpush3.bf16.xpose.msra.mxu1 %v3862_v14  ;;  %v3068_v14 = vadd.f32 %v6298_v19, %v7307_v42 }
 0x4bf   :  { %v3806_v27 = vpack.c.bf16 %v3271_v23, %v3271_v23  ;;  %5995 = vmatprep.subr.bf16.mxu1 %v6332_v1 }
 0x4c0   :  { %v3273_v4 = vpop.f32.mrf.mxu0  ;;  %v3310_v30 = vpop.f32.mrf.mxu1  ;;  %v3801_v42 = vpack.c.bf16 %v3068_v14, %v3068_v14 }
 0x4c1   :  { %v3908_v32 = vsel %vm1583_vm2, %v3806_v27, 0  ;;  %v3311_v21 = vadd.f32 %v6291_v33, %v3310_v30  ;;  %5980 = vmatmul.mubr.msk.bf16.vlgmr.msra.gmra.mxu0 %vm1583_vm2, %v3796_v28  ;;  %v6299_v28 = vld [vmem:[%s7577_s5 + $0x7] ss:$0 sm:$0xff]  ;;  %v6300_v4 = vld [vmem:[%s7575_s3 + $0x6] ss:$0 sm:$0xff] }
 0x4c2   :  { %v5872_v5 = vpop.f32.mrf.mxu0  ;;  %v5879_v35 = vpop.f32.mrf.mxu1  ;;  %5990 = vmatpush3.bf16.xpose.msra.mxu0 %v3908_v32  ;;  %5991 = vmatprep.mubr.msk.bf16.mxu0 %vm6333_vm0, %v6332_v1  ;;  %v3108_v30 = vadd.f32 %v6300_v4, %v7309_v13 }
 0x4c3   :  { %v3807_v39 = vpack.c.bf16 %v3311_v21, %v3311_v21  ;;  %6001 = vmatprep.subr.bf16.mxu0 %v6332_v1  ;;  %v6301_v35 = vld [vmem:[%s7579_s7] ss:$0 sm:$0xff] }
 0x4c4   :  { %v3313_v41 = vpop.f32.mrf.mxu1  ;;  %v3350_v44 = vpop.f32.mrf.mxu0  ;;  %v3802_v38 = vpack.c.bf16 %v3108_v30, %v3108_v30 }
 0x4c5   :  { %v3954_v45 = vsel %vm1583_vm2, %v3807_v39, 0  ;;  %v3351_v47 = vadd.f32 %v6293_v46, %v3350_v44  ;;  %5986 = vmatmul.mubr.msk.bf16.vlgmr.msra.gmra.mxu1 %vm1583_vm2, %v3797_v17  ;;  %v6302_v39 = vld [vmem:[%s7575_s3 + $0x7] ss:$0 sm:$0xff] }
 0x4c6   :  { %v5880_v48 = vpop.f32.mrf.mxu1  ;;  %v5887_v49 = vpop.f32.mrf.mxu0  ;;  %5996 = vmatpush3.bf16.xpose.msra.mxu1 %v3954_v45  ;;  %5997 = vmatprep.mubr.msk.bf16.mxu1 %vm6333_vm0, %v6332_v1  ;;  %v3148_v41 = vadd.f32 %v6302_v39, %v7311_v50 }
 0x4c7   :  { %v3808_v52 = vpack.c.bf16 %v3351_v47, %v3351_v47  ;;  %6007 = vmatprep.subr.bf16.mxu1 %v6332_v1  ;;  %v6303_v48 = vld [vmem:[%s7579_s7 + $0x1] ss:$0 sm:$0xff] }
 0x4c8   :  { %v3353_v55 = vpop.f32.mrf.mxu0  ;;  %v3390_v56 = vpop.f32.mrf.mxu1  ;;  %v3803_v50 = vpack.c.bf16 %v3148_v41, %v3148_v41 }
 0x4c9   :  { %v4000_v57 = vsel %vm1583_vm2, %v3808_v52, 0  ;;  %v3391_v61 = vadd.f32 %v6295_v62, %v3390_v56  ;;  %5992 = vmatmul.mubr.msk.bf16.vlgmr.msra.gmra.mxu0 %vm1583_vm2, %v3798_v31 }
 0x4ca   :  { %v5888_v63 = vpop.f32.mrf.mxu0  ;;  %v5895_v0 = vpop.f32.mrf.mxu1  ;;  %6002 = vmatpush3.bf16.xpose.msra.mxu0 %v4000_v57  ;;  %6003 = vmatprep.mubr.msk.bf16.mxu0 %vm6333_vm0, %v6332_v1 }
 0x4cb   :  { %v3809_v7 = vpack.c.bf16 %v3391_v61, %v3391_v61  ;;  %6013 = vmatprep.subr.bf16.mxu0 %v6332_v1 }
 0x4cc   :  { %v3393_v59 = vpop.f32.mrf.mxu1  ;;  %v3430_v9 = vpop.f32.mrf.mxu0 }
 0x4cd   :  { %v4046_v10 = vsel %vm1583_vm2, %v3809_v7, 0  ;;  %v3431_v11 = vadd.f32 %v6297_v8, %v3430_v9  ;;  %5998 = vmatmul.mubr.msk.bf16.vlgmr.msra.gmra.mxu1 %vm1583_vm2, %v3799_v34 }
 0x4ce   :  { %v5896_v15 = vpop.f32.mrf.mxu1  ;;  %v5903_v18 = vpop.f32.mrf.mxu0  ;;  %6008 = vmatpush3.bf16.xpose.msra.mxu1 %v4046_v10  ;;  %6009 = vmatprep.mubr.msk.bf16.mxu1 %vm6333_vm0, %v6332_v1 }
 0x4cf   :  { %v3810_v20 = vpack.c.bf16 %v3431_v11, %v3431_v11  ;;  %6019 = vmatprep.subr.bf16.mxu1 %v6332_v1 }
 0x4d0   :  { %v3433_v23 = vpop.f32.mrf.mxu0  ;;  %v3470_v24 = vpop.f32.mrf.mxu1 }
 0x4d1   :  { %v4092_v26 = vsel %vm1583_vm2, %v3810_v20, 0  ;;  %v3471_v25 = vadd.f32 %v6299_v28, %v3470_v24  ;;  %6004 = vmatmul.mubr.msk.bf16.vlgmr.msra.gmra.mxu0 %vm1583_vm2, %v3800_v37 }
 0x4d2   :  { %v5904_v29 = vpop.f32.mrf.mxu0  ;;  %v5911_v27 = vpop.f32.mrf.mxu1  ;;  %6014 = vmatpush3.bf16.xpose.msra.mxu0 %v4092_v26  ;;  %6015 = vmatprep.mubr.msk.bf16.mxu0 %vm6333_vm0, %v6332_v1 }
 0x4d3   :  { %v3811_v32 = vpack.c.bf16 %v3471_v25, %v3471_v25  ;;  %6025 = vmatprep.subr.bf16.mxu0 %v6332_v1 }
 0x4d4   :  { %v3473_v33 = vpop.f32.mrf.mxu1  ;;  %v3510_v21 = vpop.f32.mrf.mxu0 }
 0x4d5   :  { %v4138_v5 = vsel %vm1583_vm2, %v3811_v32, 0  ;;  %6010 = vmatmul.mubr.msk.bf16.vlgmr.msra.gmra.mxu1 %vm1583_vm2, %v3801_v42  ;;  %v3511_v17 = vadd.f32 %v6301_v35, %v3510_v21 }
 0x4d6   :  { %v5912_v36 = vpop.f32.mrf.mxu1  ;;  %6020 = vmatpush3.bf16.xpose.msra.mxu1 %v4138_v5  ;;  %6021 = vmatprep.mubr.msk.bf16.mxu1 %vm6333_vm0, %v6332_v1  ;;  %v5919_v13 = vpop.f32.mrf.mxu0 }
 0x4d7   :  { %v4276_v44 = vpack.c.bf16 %v3511_v17, %v3511_v17  ;;  %6031 = vmatprep.subr.bf16.mxu1 %v6332_v1 }
 0x4d8   :  { %v3550_v45 = vpop.f32.mrf.mxu1  ;;  %v3513_v46 = vpop.f32.mrf.mxu0 }
 0x4d9   :  { %6016 = vmatmul.mubr.msk.bf16.vlgmr.msra.gmra.mxu0 %vm1583_vm2, %v3802_v38  ;;  %v4288_v47 = vsel %vm2060_vm3, %v4276_v44, 0  ;;  %v3551_v49 = vadd.f32 %v6303_v48, %v3550_v45 }
 0x4da   :  { %v5927_v31 = vpop.f32.mrf.mxu1  ;;  %v5920_v53 = vpop.f32.mrf.mxu0  ;;  %6026 = vmatpush3.bf16.msra.mxu0 %v4288_v47  ;;  %6027 = vmatprep.mubr.msk.bf16.mxu0 %vm6333_vm0, %v6332_v1 }
 0x4db   :  { %v4277_v54 = vpack.c.bf16 %v3551_v49, %v3551_v49  ;;  %6037 = vmatprep.subr.bf16.mxu0 %v6332_v1 }
 0x4dc   :  { %v3553_v52 = vpop.f32.mrf.mxu1  ;;  %v7412_v55 = vpop.f32.mrf.mxu0 }
 0x4dd   :  { %6022 = vmatmul.mubr.msk.bf16.vlgmr.msra.gmra.mxu1 %vm1583_vm2, %v3803_v50  ;;  %v4334_v56 = vsel %vm2060_vm3, %v4277_v54, 0 }
 0x4de   :  { %v5928_v57 = vpop.f32.mrf.mxu1  ;;  %v5935_v62 = vpop.f32.mrf.mxu0  ;;  %6032 = vmatpush3.bf16.msra.mxu1 %v4334_v56  ;;  %6033 = vmatprep.mubr.msk.bf16.mxu1 %vm6333_vm0, %v6332_v1 }
 0x4df   :  { %6043 = vmatprep.subr.bf16.mxu1 %v6332_v1 }
 0x4e0   :  { %v7419_v61 = vpop.f32.mrf.mxu1  ;;  %v3593_v63 = vpop.f32.mrf.mxu0 }
 0x4e2   :  { %v5943_v0 = vpop.f32.mrf.mxu1  ;;  %v5936_v34 = vpop.f32.mrf.mxu0 }
 0x4e4   :  { %v3633_v2 = vpop.f32.mrf.mxu1  ;;  %v7421_v6 = vpop.f32.mrf.mxu0 }
 0x4e6   :  { %v5944_v7 = vpop.f32.mrf.mxu1  ;;  %v5951_v59 = vpop.f32.mrf.mxu0 }
 0x4e8   :  { %v7423_v9 = vpop.f32.mrf.mxu1  ;;  %v3673_v10 = vpop.f32.mrf.mxu0 }
 0x4ea   :  { %v5959_v8 = vpop.f32.mrf.mxu1  ;;  %v5952_v11 = vpop.f32.mrf.mxu0 }
 0x4ec   :  { %v3713_v15 = vpop.f32.mrf.mxu1  ;;  %v7425_v18 = vpop.f32.mrf.mxu0 }
 0x4ee   :  { %v5960_v37 = vpop.f32.mrf.mxu1  ;;  %v5967_v19 = vpop.f32.mrf.mxu0 }
 0x4f0   :  { %v7427_v14 = vpop.f32.mrf.mxu1  ;;  %v3753_v20 = vpop.f32.mrf.mxu0 }
 0x4f2   :  { %v5975_v23 = vpop.f32.mrf.mxu1  ;;  %v5968_v24 = vpop.f32.mrf.mxu0 }
 0x4f4   :  { %v3793_v26 = vpop.f32.mrf.mxu1 }
 0x4f6   :  { %v5976_v28 = vpop.f32.mrf.mxu1 }
 0x581   :  { %v3852_v25 = vpop.f32.mrf.mxu0 }
 0x582   :  { %v4180_v29 = vsel %vm1952_vm4, %v3852_v25, -inf }
 0x583   :  { %4181 = vmax.xlane.f32.xlu0 %v4180_v29  ;;  %v5981_v27 = vpop.f32.mrf.mxu0 }
 0x585   :  { %v3855_v42 = vpop.f32.mrf.mxu0  ;;  %v3898_v4 = vpop.f32.mrf.mxu1 }
 0x586   :  { %v4183_v30 = vsel %vm1952_vm4, %v3898_v4, -inf }
 0x587   :  { %4184 = vmax.xlane.f32.xlu1 %v4183_v30  ;;  %v5982_v32 = vpop.f32.mrf.mxu0  ;;  %v5987_v33 = vpop.f32.mrf.mxu1 }
 0x589   :  { %v3901_v21 = vpop.f32.mrf.mxu1  ;;  %v3944_v5 = vpop.f32.mrf.mxu0 }
 0x58a   :  { %v4186_v35 = vsel %vm1952_vm4, %v3944_v5, -inf }
 0x58b   :  { %v5988_v17 = vpop.f32.mrf.mxu1  ;;  %4187 = vmax.xlane.f32.xlu0 %v4186_v35  ;;  %v5993_v36 = vpop.f32.mrf.mxu0 }
 0x58d   :  { %v3947_v13 = vpop.f32.mrf.mxu0  ;;  %v3990_v38 = vpop.f32.mrf.mxu1 }
 0x58e   :  { %v4189_v39 = vsel %vm1952_vm4, %v3990_v38, -inf }
 0x58f   :  { %4190 = vmax.xlane.f32.xlu1 %v4189_v39  ;;  %v5994_v41 = vpop.f32.mrf.mxu0  ;;  %v5999_v44 = vpop.f32.mrf.mxu1 }
 0x591   :  { %v3993_v45 = vpop.f32.mrf.mxu1  ;;  %v4036_v46 = vpop.f32.mrf.mxu0 }
 0x592   :  { %v4192_v47 = vsel %vm1952_vm4, %v4036_v46, -inf }
 0x593   :  { %v6000_v48 = vpop.f32.mrf.mxu1  ;;  %4193 = vmax.xlane.f32.xlu0 %v4192_v47  ;;  %v6005_v49 = vpop.f32.mrf.mxu0 }
 0x595   :  { %v4039_v31 = vpop.f32.mrf.mxu0  ;;  %v4082_v53 = vpop.f32.mrf.mxu1 }
 0x596   :  { %v4195_v50 = vsel %vm1952_vm4, %v4082_v53, -inf }
 0x597   :  { %4196 = vmax.xlane.f32.xlu1 %v4195_v50  ;;  %v6006_v54 = vpop.f32.mrf.mxu0  ;;  %v6011_v52 = vpop.f32.mrf.mxu1 }
 0x599   :  { %v4085_v56 = vpop.f32.mrf.mxu1  ;;  %v4128_v57 = vpop.f32.mrf.mxu0 }
 0x59a   :  { %v4198_v62 = vsel %vm1952_vm4, %v4128_v57, -inf }
 0x59b   :  { %v6012_v63 = vpop.f32.mrf.mxu1  ;;  %4199 = vmax.xlane.f32.xlu0 %v4198_v62  ;;  %v6017_v0 = vpop.f32.mrf.mxu0 }
 0x59d   :  { %v4131_v34 = vpop.f32.mrf.mxu0  ;;  %v4174_v2 = vpop.f32.mrf.mxu1 }
 0x59e   :  { %v4201_v7 = vsel %vm1952_vm4, %v4174_v2, -inf }
 0x59f   :  { %4202 = vmax.xlane.f32.xlu1 %v4201_v7  ;;  %v6018_v59 = vpop.f32.mrf.mxu0  ;;  %v6023_v10 = vpop.f32.mrf.mxu1  ;;  %v6304_v7 = vld [vmem:[%s7579_s7 + $0x2] ss:$0 sm:$0xff] }
 0x5a0   :  { %v3591_v59 = vadd.f32 %v6304_v7, %v7412_v55  ;;  %v6306_v55 = vld [vmem:[%s7579_s7 + $0x4] ss:$0 sm:$0xff] }
 0x5a1   :  { %v4177_v8 = vpop.f32.mrf.mxu1 }
 0x5a3   :  { %v6024_v11 = vpop.f32.mrf.mxu1 }
 0x5a4   :  { %v4278_v11 = vpack.c.bf16 %v3591_v59, %v3591_v59 }
 0x60c   :  { %v4182_v15 = vpop.xlane.xlu0 %4181 }
 0x60d   :  { %v4204_v37 = vsub.f32 %v3852_v25, %v4182_v15  ;;  %v6305_v15 = vld [vmem:[%s7579_s7 + $0x3] ss:$0 sm:$0xff] }
 0x60f   :  { %v4212_v19 = vmul.f32 1.442695, %v4204_v37  ;;  %v3631_v37 = vadd.f32 %v6305_v15, %v7419_v61 }
 0x610   :  { %v4185_v20 = vpop.xlane.xlu1 %4184 }
 0x611   :  { %6206 = vpow2.f32 %v4212_v19  ;;  %v4205_v23 = vsub.f32 %v3898_v4, %v4185_v20 }
 0x613   :  { %v4214_v24 = vmul.f32 1.442695, %v4205_v23 }
 0x614   :  { %v4188_v26 = vpop.xlane.xlu0 %4187 }
 0x615   :  { %6208 = vpow2.f32 %v4214_v24  ;;  %v4206_v28 = vsub.f32 %v3944_v5, %v4188_v26  ;;  %v4380_v26 = vsel %vm2060_vm3, %v4278_v11, 0 }
 0x617   :  { %v4216_v29 = vmul.f32 1.442695, %v4206_v28  ;;  %v4279_v28 = vpack.c.bf16 %v3631_v37, %v3631_v37 }
 0x618   :  { %v4191_v27 = vpop.xlane.xlu1 %4190 }
 0x619   :  { %6210 = vpow2.f32 %v4216_v29  ;;  %v4207_v42 = vsub.f32 %v3990_v38, %v4191_v27  ;;  %v3671_v29 = vadd.f32 %v6306_v55, %v7421_v6  ;;  %v6307_v6 = vld [vmem:[%s7579_s7 + $0x5] ss:$0 sm:$0xff] }
 0x61b   :  { %v4218_v30 = vmul.f32 1.442695, %v4207_v42 }
 0x61c   :  { %v4194_v32 = vpop.xlane.xlu0 %4193 }
 0x61d   :  { %6212 = vpow2.f32 %v4218_v30  ;;  %v4208_v33 = vsub.f32 %v4036_v46, %v4194_v32  ;;  %v4426_v32 = vsel %vm2060_vm3, %v4279_v28, 0 }
 0x61e   :  { %v6207_v21 = vpop.eup %6206 }
 0x61f   :  { %v4220_v35 = vmul.f32 1.442695, %v4208_v33  ;;  %v4228_v25 = vsel %vm1952_vm4, %v6207_v21, 0.0  ;;  %v4280_v33 = vpack.c.bf16 %v3671_v29, %v3671_v29 }
 0x620   :  { %v4197_v17 = vpop.xlane.xlu1 %4196  ;;  %4229 = vadd.xlane.f32.xlu0 %v4228_v25 }
 0x621   :  { %6214 = vpow2.f32 %v4220_v35  ;;  %v4209_v4 = vsub.f32 %v4082_v53, %v4197_v17 }
 0x622   :  { %v6209_v36 = vpop.eup %6208 }
 0x623   :  { %v4222_v13 = vmul.f32 1.442695, %v4209_v4  ;;  %v4231_v5 = vsel %vm1952_vm4, %v6209_v36, 0.0 }
 0x624   :  { %4232 = vadd.xlane.f32.xlu1 %v4231_v5  ;;  %v4200_v39 = vpop.xlane.xlu0 %4199 }
 0x625   :  { %6216 = vpow2.f32 %v4222_v13  ;;  %v4210_v38 = vsub.f32 %v4128_v57, %v4200_v39 }
 0x626   :  { %v6211_v41 = vpop.eup %6210 }
 0x627   :  { %v4224_v44 = vmul.f32 1.442695, %v4210_v38  ;;  %v4234_v45 = vsel %vm1952_vm4, %v6211_v41, 0.0 }
 0x628   :  { %v4203_v46 = vpop.xlane.xlu1 %4202  ;;  %4235 = vadd.xlane.f32.xlu0 %v4234_v45 }
 0x629   :  { %6218 = vpow2.f32 %v4224_v44  ;;  %v4211_v47 = vsub.f32 %v4174_v2, %v4203_v46 }
 0x62a   :  { %v7440_v48 = vpop.eup %6212 }
 0x62b   :  { %v4226_v49 = vmul.f32 1.442695, %v4211_v47  ;;  %v4237_v31 = vsel %vm1952_vm4, %v7440_v48, 0.0 }
 0x62c   :  { %4238 = vadd.xlane.f32.xlu1 %v4237_v31 }
 0x62d   :  { %6220 = vpow2.f32 %v4226_v49 }
 0x62e   :  { %v7444_v53 = vpop.eup %6214 }
 0x62f   :  { %v4240_v50 = vsel %vm1952_vm4, %v7444_v53, 0.0 }
 0x630   :  { %4241 = vadd.xlane.f32.xlu0 %v4240_v50 }
 0x632   :  { %v7448_v54 = vpop.eup %6216 }
 0x633   :  { %v4243_v52 = vsel %vm1952_vm4, %v7448_v54, 0.0 }
 0x634   :  { %4244 = vadd.xlane.f32.xlu1 %v4243_v52 }
 0x636   :  { %v7452_v56 = vpop.eup %6218 }
 0x637   :  { %v4246_v57 = vsel %vm1952_vm4, %v7452_v56, 0.0 }
 0x638   :  { %4247 = vadd.xlane.f32.xlu0 %v4246_v57 }
 0x63a   :  { %v7456_v62 = vpop.eup %6220 }
 0x63b   :  { %v4249_v63 = vsel %vm1952_vm4, %v7456_v62, 0.0 }
 0x63c   :  { %4250 = vadd.xlane.f32.xlu1 %v4249_v63 }
 0x6a9   :  { %v4230_v0 = vpop.xlane.xlu0 %4229 }
 0x6aa   :  { %6222 = vrcp.f32 %v4230_v0 }
 0x6ad   :  { %v4233_v34 = vpop.xlane.xlu1 %4232 }
 0x6ae   :  { %6224 = vrcp.f32 %v4233_v34 }
 0x6b1   :  { %v4236_v2 = vpop.xlane.xlu0 %4235 }
 0x6b2   :  { %6226 = vrcp.f32 %v4236_v2 }
 0x6b5   :  { %v4239_v10 = vpop.xlane.xlu1 %4238 }
 0x6b6   :  { %6228 = vrcp.f32 %v4239_v10 }
 0x6b7   :  { %v6223_v8 = vpop.eup %6222 }
 0x6b8   :  { %v4260_v19 = vmul.f32 %v6223_v8, %v6207_v21  ;;  %v3711_v21 = vadd.f32 %v6307_v6, %v7423_v9  ;;  %v6308_v9 = vld [vmem:[%s7579_s7 + $0x6] ss:$0 sm:$0xff] }
 0x6b9   :  { %v4242_v20 = vpop.xlane.xlu0 %4241  ;;  %v3751_v5 = vadd.f32 %v6308_v9, %v7425_v18  ;;  %v6309_v18 = vld [vmem:[%s7579_s7 + $0x7] ss:$0 sm:$0xff]  ;;  %s6334_s7 = smov [#allocation2]  }
 0x6ba   :  { %v4268_v23 = vpack.c.bf16 %v4260_v19, %v4260_v19  ;;  %6230 = vrcp.f32 %v4242_v20  ;;  %v4281_v13 = vpack.c.bf16 %v3711_v21, %v3711_v21  ;;  %v3791_v47 = vadd.f32 %v6309_v18, %v7427_v14  ;;  %s5027_s8 = sshll.u32 %s6334_s7, 4  ;;  %s5028_s8 = int_to_ptr.vmem [resolvable:$true] %s5027_s8 }
 0x6bb   :  { %v6225_v24 = vpop.eup %6224  ;;  %v4282_v46 = vpack.c.bf16 %v3751_v5, %v3751_v5  ;;  %s6310_s1 = scalar_lea.vmem %s5028_s8, 256  ;;  %p6315_p1 = scmp.lt.s32.totalorder %s5028_s8, %s5028_s8 }
 0x6bc   :  { %v4261_v27 = vmul.f32 %v6225_v24, %v6209_v36  ;;  %6028 = vmatmul.mubr.msk.bf16.vlgmr.msra.gmra.mxu0 %vm1952_vm4, %v4268_v23  ;;  %v4472_v36 = vsel %vm2060_vm3, %v4280_v33, 0  ;;  %v4518_v45 = vsel %vm2060_vm3, %v4281_v13, 0  ;;  %v4283_v52 = vpack.c.bf16 %v3791_v47, %v3791_v47  ;;  %p6311_p0 = scmp.ne.s32.totalorder %s5028_s8, %s6310_s1  ;;  %p6316_p2 = scmp.lt.s32.totalorder %s6310_s1, %s6310_s1 }
 0x6bd   :  { %6038 = vmatpush3.bf16.msra.mxu0 %v4380_v26  ;;  %v4245_v42 = vpop.xlane.xlu1 %4244  ;;  %6039 = vmatprep.mubr.msk.bf16.mxu0 %vm6333_vm0, %v6332_v1  ;;  %v4564_v50 = vsel %vm2060_vm3, %v4282_v46, 0 }
 0x6be   :  { %v4269_v61 = vpack.c.bf16 %v4261_v27, %v4261_v27  ;;  %6232 = vrcp.f32 %v4245_v42  ;;  %6049 = vmatprep.subr.bf16.mxu0 %v6332_v1  ;;  %v4610_v63 = vsel %vm2060_vm3, %v4283_v52, 0  ;;  %p6317_p3 = por %p6316_p2, %p6315_p1 }
 0x6bf   :  { %v6227_v30 = vpop.eup %6226 }
 0x6c0   :  { %v4262_v35 = vmul.f32 %v6227_v30, %v6211_v41  ;;  %6034 = vmatmul.mubr.msk.bf16.vlgmr.msra.gmra.mxu1 %vm1952_vm4, %v4269_v61  ;;  %p6318_p4 = pnand %p6317_p3, %p6311_p0 }
 0x6c1   :  { %6044 = vmatpush3.bf16.msra.mxu1 %v4426_v32  ;;  %v4248_v25 = vpop.xlane.xlu0 %4247  ;;  %6045 = vmatprep.mubr.msk.bf16.mxu1 %vm6333_vm0, %v6332_v1 }
 0x6c2   :  { %v4270_v17 = vpack.c.bf16 %v4262_v35, %v4262_v35  ;;  %6234 = vrcp.f32 %v4248_v25  ;;  %6055 = vmatprep.subr.bf16.mxu1 %v6332_v1 }
 0x6c3   :  { %v6229_v4 = vpop.eup %6228 }
 0x6c4   :  { %v4263_v39 = vmul.f32 %v6229_v4, %v7440_v48  ;;  %6040 = vmatmul.mubr.msk.bf16.vlgmr.msra.gmra.mxu0 %vm1952_vm4, %v4270_v17 }
 0x6c5   :  { %6050 = vmatpush3.bf16.msra.mxu0 %v4472_v36  ;;  %v4251_v38 = vpop.xlane.xlu1 %4250  ;;  %6051 = vmatprep.mubr.msk.bf16.mxu0 %vm6333_vm0, %v6332_v1 }
 0x6c6   :  { %v4271_v41 = vpack.c.bf16 %v4263_v39, %v4263_v39  ;;  %6236 = vrcp.f32 %v4251_v38  ;;  %6061 = vmatprep.subr.bf16.mxu0 %v6332_v1 }
 0x6c7   :  { %v6231_v44 = vpop.eup %6230 }
 0x6c8   :  { %v4264_v48 = vmul.f32 %v6231_v44, %v7444_v53  ;;  %6046 = vmatmul.mubr.msk.bf16.vlgmr.msra.gmra.mxu1 %vm1952_vm4, %v4271_v41 }
 0x6c9   :  { %6056 = vmatpush3.bf16.msra.mxu1 %v4518_v45  ;;  %6057 = vmatprep.mubr.msk.bf16.mxu1 %vm6333_vm0, %v6332_v1 }
 0x6ca   :  { %v4272_v49 = vpack.c.bf16 %v4264_v48, %v4264_v48  ;;  %6067 = vmatprep.subr.bf16.mxu1 %v6332_v1 }
 0x6cb   :  { %v6233_v31 = vpop.eup %6232 }
 0x6cc   :  { %v4265_v57 = vmul.f32 %v6233_v31, %v7448_v54  ;;  %6052 = vmatmul.mubr.msk.bf16.vlgmr.msra.gmra.mxu0 %vm1952_vm4, %v4272_v49 }
 0x6cd   :  { %6062 = vmatpush3.bf16.msra.mxu0 %v4564_v50  ;;  %6063 = vmatprep.mubr.msk.bf16.mxu0 %vm6333_vm0, %v6332_v1 }
 0x6ce   :  { %v4273_v14 = vpack.c.bf16 %v4265_v57, %v4265_v57  ;;  %6073 = vmatprep.subr.bf16.mxu0 %v6332_v1 }
 0x6cf   :  { %v6235_v53 = vpop.eup %6234 }
 0x6d0   :  { %v4266_v0 = vmul.f32 %v6235_v53, %v7452_v56  ;;  %6058 = vmatmul.mubr.msk.bf16.vlgmr.msra.gmra.mxu1 %vm1952_vm4, %v4273_v14 }
 0x6d1   :  { %6068 = vmatpush3.bf16.msra.mxu1 %v4610_v63  ;;  %6069 = vmatprep.mubr.msk.bf16.mxu1 %vm6333_vm0, %v6332_v1 }
 0x6d2   :  { %v4274_v54 = vpack.c.bf16 %v4266_v0, %v4266_v0  ;;  %6079 = vmatprep.subr.bf16.mxu1 %v6332_v1 }
 0x6d3   :  { %v6237_v34 = vpop.eup %6236 }
 0x6d4   :  { %v4267_v2 = vmul.f32 %v6237_v34, %v7456_v62  ;;  %6064 = vmatmul.mubr.msk.bf16.vlgmr.msra.gmra.mxu0 %vm1952_vm4, %v4274_v54 }
 0x6d5   :  { %6074 = vmatpush3.bf16.msra.mxu0 %v6907_v40  ;;  %6075 = vmatprep.mubr.msk.bf16.mxu0 %vm6333_vm0, %v6332_v1 }
 0x6d6   :  { %v4275_v56 = vpack.c.bf16 %v4267_v2, %v4267_v2  ;;  %6085 = vmatprep.subr.bf16.mxu0 %v6332_v1 }
 0x6d8   :  { %6070 = vmatmul.mubr.msk.bf16.vlgmr.msra.gmra.mxu1 %vm1952_vm4, %v4275_v56 }
 0x6d9   :  { %6080 = vmatpush3.bf16.msra.mxu1 %v6922_v43  ;;  %6081 = vmatprep.mubr.msk.bf16.mxu1 %vm6333_vm0, %v6332_v1 }
 0x6da   :  { %6091 = vmatprep.subr.bf16.mxu1 %v6332_v1 }
 0x77c   :  { %v4324_v62 = vpop.f32.mrf.mxu0 }
 0x77d   :  { %v4652_v7 = vpack.c.bf16 %v4324_v62, %v4324_v62 }
 0x77e   :  { %v6029_v59 = vpop.f32.mrf.mxu0 }
 0x77f   :  { %6076 = vmatmul.mubr.msk.bf16.vlgmr.msra.gmra.mxu0 %vm1583_vm2, %v4652_v7 }
 0x780   :  { %v4327_v40 = vpop.f32.mrf.mxu0  ;;  %v4370_v10 = vpop.f32.mrf.mxu1  ;;  %6086 = vmatpush3.bf16.msra.mxu0 %v6930_v12  ;;  %6087 = vmatprep.mubr.msk.bf16.mxu0 %vm6333_vm0, %v6332_v1 }
 0x781   :  { %v4653_v8 = vpack.c.bf16 %v4370_v10, %v4370_v10  ;;  %6097 = vmatprep.subr.bf16.mxu0 %v6332_v1 }
 0x782   :  { %v6030_v43 = vpop.f32.mrf.mxu0  ;;  %v6035_v11 = vpop.f32.mrf.mxu1 }
 0x783   :  { %6082 = vmatmul.mubr.msk.bf16.vlgmr.msra.gmra.mxu1 %vm1583_vm2, %v4653_v8 }
 0x784   :  { %v4373_v15 = vpop.f32.mrf.mxu1  ;;  %v4416_v37 = vpop.f32.mrf.mxu0  ;;  %6092 = vmatpush3.bf16.msra.mxu1 %v6940_v51  ;;  %6093 = vmatprep.mubr.msk.bf16.mxu1 %vm6333_vm0, %v6332_v1 }
 0x785   :  { %v4654_v19 = vpack.c.bf16 %v4416_v37, %v4416_v37  ;;  %6103 = vmatprep.subr.bf16.mxu1 %v6332_v1 }
 0x786   :  { %v6036_v12 = vpop.f32.mrf.mxu1  ;;  %v6041_v20 = vpop.f32.mrf.mxu0 }
 0x787   :  { %6088 = vmatmul.mubr.msk.bf16.vlgmr.msra.gmra.mxu0 %vm1583_vm2, %v4654_v19 }
 0x788   :  { %v4419_v23 = vpop.f32.mrf.mxu0  ;;  %v4462_v24 = vpop.f32.mrf.mxu1  ;;  %6098 = vmatpush3.bf16.msra.mxu0 %v6951_v58  ;;  %6099 = vmatprep.mubr.msk.bf16.mxu0 %vm6333_vm0, %v6332_v1 }
 0x789   :  { %v4655_v26 = vpack.c.bf16 %v4462_v24, %v4462_v24  ;;  %6109 = vmatprep.subr.bf16.mxu0 %v6332_v1 }
 0x78a   :  { %v6042_v51 = vpop.f32.mrf.mxu0  ;;  %v6047_v28 = vpop.f32.mrf.mxu1 }
 0x78b   :  { %6094 = vmatmul.mubr.msk.bf16.vlgmr.msra.gmra.mxu1 %vm1583_vm2, %v4655_v26 }
 0x78c   :  { %v4465_v55 = vpop.f32.mrf.mxu1  ;;  %v4508_v29 = vpop.f32.mrf.mxu0  ;;  %6104 = vmatpush3.bf16.msra.mxu1 %v6962_v3  ;;  %6105 = vmatprep.mubr.msk.bf16.mxu1 %vm6333_vm0, %v6332_v1 }
 0x78d   :  { %v4656_v27 = vpack.c.bf16 %v4508_v29, %v4508_v29  ;;  %6115 = vmatprep.subr.bf16.mxu1 %v6332_v1 }
 0x78e   :  { %v6048_v58 = vpop.f32.mrf.mxu1  ;;  %v6053_v42 = vpop.f32.mrf.mxu0 }
 0x78f   :  { %6100 = vmatmul.mubr.msk.bf16.vlgmr.msra.gmra.mxu0 %vm1583_vm2, %v4656_v27 }
 0x790   :  { %v4511_v61 = vpop.f32.mrf.mxu0  ;;  %v4554_v30 = vpop.f32.mrf.mxu1  ;;  %6110 = vmatpush3.bf16.msra.mxu0 %v6973_v60  ;;  %6111 = vmatprep.mubr.msk.bf16.mxu0 %vm6333_vm0, %v6332_v1 }
 0x791   :  { %v4657_v32 = vpack.c.bf16 %v4554_v30, %v4554_v30 }
 0x792   :  { %v6054_v33 = vpop.f32.mrf.mxu0  ;;  %v6059_v3 = vpop.f32.mrf.mxu1 }
 0x793   :  { %6106 = vmatmul.mubr.msk.bf16.vlgmr.msra.gmra.mxu1 %vm1583_vm2, %v4657_v32 }
 0x794   :  { %v4557_v6 = vpop.f32.mrf.mxu1  ;;  %v4600_v21 = vpop.f32.mrf.mxu0  ;;  %6116 = vmatpush3.bf16.msra.mxu1 %v6984_v22  ;;  %6117 = vmatprep.mubr.msk.bf16.mxu1 %vm6333_vm0, %v6332_v1 }
 0x795   :  { %v4658_v35 = vpack.c.bf16 %v4600_v21, %v4600_v21 }
 0x796   :  { %v6060_v25 = vpop.f32.mrf.mxu1  ;;  %v6065_v17 = vpop.f32.mrf.mxu0 }
 0x797   :  { %6112 = vmatmul.mubr.msk.bf16.vlgmr.msra.gmra.mxu0 %vm1583_vm2, %v4658_v35 }
 0x798   :  { %v4603_v60 = vpop.f32.mrf.mxu0  ;;  %v4646_v4 = vpop.f32.mrf.mxu1 }
 0x799   :  { %v4659_v36 = vpack.c.bf16 %v4646_v4, %v4646_v4 }
 0x79a   :  { %v6066_v13 = vpop.f32.mrf.mxu0  ;;  %v6071_v9 = vpop.f32.mrf.mxu1 }
 0x79b   :  { %6118 = vmatmul.mubr.msk.bf16.vlgmr.msra.gmra.mxu1 %vm1583_vm2, %v4659_v36 }
 0x79c   :  { %v4649_v5 = vpop.f32.mrf.mxu1 }
 0x79e   :  { %v6072_v39 = vpop.f32.mrf.mxu1 }
 0x83f   :  { %v4697_v38 = vpop.f32.mrf.mxu0 }
 0x840   :  { %v5004_v63 = vsel %vm228_vm1, %v4697_v38, 0.0 }
 0x841   :  { %v6077_v41 = vpop.f32.mrf.mxu0 }
 0x843   :  { %v4700_v22 = vpop.f32.mrf.mxu0  ;;  %v4740_v44 = vpop.f32.mrf.mxu1 }
 0x844   :  { %v5005_v57 = vsel %vm228_vm1, %v4740_v44, 0.0 }
 0x845   :  { %v6078_v45 = vpop.f32.mrf.mxu0  ;;  %v6083_v1 = vpop.f32.mrf.mxu1  ;;  %v5006_v54 = vadd.f32 %v5005_v57, %v5004_v63 }
 0x847   :  { %v4743_v46 = vpop.f32.mrf.mxu1  ;;  %v4783_v18 = vpop.f32.mrf.mxu0 }
 0x848   :  { %v5007_v0 = vsel %vm228_vm1, %v4783_v18, 0.0 }
 0x849   :  { %v6084_v47 = vpop.f32.mrf.mxu1  ;;  %v6089_v48 = vpop.f32.mrf.mxu0  ;;  %v5008_v62 = vadd.f32 %v5007_v0, %v5006_v54 }
 0x84b   :  { %v4786_v49 = vpop.f32.mrf.mxu0  ;;  %v4826_v31 = vpop.f32.mrf.mxu1 }
 0x84c   :  { %v5009_v56 = vsel %vm228_vm1, %v4826_v31, 0.0 }
 0x84d   :  { %v6090_v50 = vpop.f32.mrf.mxu0  ;;  %v6095_v52 = vpop.f32.mrf.mxu1  ;;  %v5010_v10 = vadd.f32 %v5009_v56, %v5008_v62 }
 0x84f   :  { %v4829_v14 = vpop.f32.mrf.mxu1  ;;  %v4869_v53 = vpop.f32.mrf.mxu0 }
 0x850   :  { %v5011_v40 = vsel %vm228_vm1, %v4869_v53, 0.0 }
 0x851   :  { %v6096_v34 = vpop.f32.mrf.mxu1  ;;  %v6101_v2 = vpop.f32.mrf.mxu0  ;;  %v5012_v15 = vadd.f32 %v5011_v40, %v5010_v10 }
 0x853   :  { %v4872_v7 = vpop.f32.mrf.mxu0  ;;  %v4912_v59 = vpop.f32.mrf.mxu1 }
 0x854   :  { %v5013_v11 = vsel %vm228_vm1, %v4912_v59, 0.0 }
 0x855   :  { %v6102_v8 = vpop.f32.mrf.mxu0  ;;  %v6107_v43 = vpop.f32.mrf.mxu1  ;;  %v5014_v20 = vadd.f32 %v5013_v11, %v5012_v15 }
 0x857   :  { %v4915_v37 = vpop.f32.mrf.mxu1  ;;  %v4955_v19 = vpop.f32.mrf.mxu0 }
 0x858   :  { %v5015_v12 = vsel %vm228_vm1, %v4955_v19, 0.0 }
 0x859   :  { %v6108_v23 = vpop.f32.mrf.mxu1  ;;  %v6113_v24 = vpop.f32.mrf.mxu0  ;;  %v5016_v26 = vadd.f32 %v5015_v12, %v5014_v20 }
 0x85b   :  { %v4958_v51 = vpop.f32.mrf.mxu0  ;;  %v4998_v28 = vpop.f32.mrf.mxu1 }
 0x85c   :  { %v5017_v55 = vsel %vm228_vm1, %v4998_v28, 0.0 }
 0x85d   :  { %v5018_v29 = vadd.f32 %v5017_v55, %v5016_v26  ;;  %v6114_v27 = vpop.f32.mrf.mxu0  ;;  %v6119_v58 = vpop.f32.mrf.mxu1 }
 0x85f   :  { %v5019_v42 = vadd.f32 %v7296_v16, %v5018_v29  ;;  %v5001_v61 = vpop.f32.mrf.mxu1 }
 0x861   :  { %5021 = vst.msk [vmem:[#allocation2 + $0x8] sm:$0xff] %vm228_vm1, %v5019_v42  ;;  %v6120_v30 = vpop.f32.mrf.mxu1 }
 0x862   :  { %6321 = shalt.err (!%p6318_p4)
}
 0x863   :  { %s6335_s17 = smov 128   ;;  %s6336_s4 = smov 8  }
 0x864   :  { %5033 = dma.vmem_to_hbm [thread:$0]  %s5028_s8, 256, %s7582_s10, [#allocation3], %s6335_s17, %s6335_s17, %s6336_s4  }
 0x865   :  { %6330 = dma.done.wait [#allocation3], 256  }
 0x866   :  { %6331 = vsyncadd [#allocation3], 4294967040 }
 0x867   :  { %5037 = vsyncpa [#allocation3], 1 }

</bundles_post_ra>
